<compile_context>
chip_gen: v7x
topology: tpu7x:2x2x1
jax: 0.10.0
libtpu: 0.0.40
codegen_flags: <defaults>
</compile_context>

<pallas_src>
import functools

import jax
import jax.numpy as jnp
from jax.experimental import pallas as pl
from jax.experimental.pallas import tpu as pltpu


# --------------------------------------------------------------------------
# Fused kernel: all layers + wavefronted time recurrence + final fc.
# --------------------------------------------------------------------------
def _fused_lstm_kernel(*refs, num_layers, seq_len, batch_pad):
    # refs = (x_tm, [w_ih_T, w_hh_T, bias] * num_layers, fc_w_T, fc_b, out)
    x_ref = refs[0]
    out_ref = refs[-1]
    fc_b_ref = refs[-2]
    fc_w_ref = refs[-3]
    layer_refs = refs[1:1 + 3 * num_layers]

    T, Bp, L = seq_len, batch_pad, num_layers

    # Weights loaded once; bf16 MXU operands, everything else f32.
    w_ih = [layer_refs[3 * l][...] for l in range(L)]         # bf16 (D_l, 4H)
    w_hh = [layer_refs[3 * l + 1][...] for l in range(L)]     # bf16 (H, 4H)
    bias = [layer_refs[3 * l + 2][...] for l in range(L)]     # f32  (1, 4H)
    H = w_hh[0].shape[0]

    # Hoisted layer-0 input projection: one MXU pass over all timesteps
    # (time-major row order t*Bp + b); only h @ W_hh stays on the serial path.
    x_tm = x_ref[...]                                          # bf16 (T*Bp, D)
    gx0 = jnp.dot(x_tm, w_ih[0],
                  preferred_element_type=jnp.float32) + bias[0]  # f32 (T*Bp, 4H)

    # Lane mask for the single full-vreg gate nonlinearity (g lanes -> tanh),
    # hoisted out of the recurrence.
    lane = jax.lax.broadcasted_iota(jnp.int32, (Bp, 4 * H), dimension=1)
    g_mask = (lane >= 2 * H) & (lane < 3 * H)

    def cell_step(gates, c_prev):
        # One tanh + one sigmoid over the whole (Bp, 4H) vreg instead of four
        # sliced activations.
        act = jnp.where(g_mask, jnp.tanh(gates), jax.nn.sigmoid(gates))
        i = act[:, 0 * H:1 * H]
        f = act[:, 1 * H:2 * H]
        g = act[:, 2 * H:3 * H]
        o = act[:, 3 * H:4 * H]
        c_new = f * c_prev + i * g
        h_new = o * jnp.tanh(c_new)
        return h_new, c_new

    h = [jnp.zeros((Bp, H), jnp.float32) for _ in range(L)]
    c = [jnp.zeros((Bp, H), jnp.float32) for _ in range(L)]

    # Wavefront over (layer, time): iteration k computes layer l's step t=k-l.
    # Layers are processed in DESCENDING order so layer l reads layer l-1's
    # step-(k-l) output before layer l-1 advances to step k-l+1.
    for k in range(T + L - 1):
        for l in reversed(range(L)):
            t = k - l
            if not (0 <= t < T):
                continue
            if l == 0:
                gates = gx0[t * Bp:(t + 1) * Bp, :] + jnp.dot(
                    h[0].astype(jnp.bfloat16), w_hh[0],
                    preferred_element_type=jnp.float32)
            else:
                gates = (jnp.dot(h[l - 1].astype(jnp.bfloat16), w_ih[l],
                                 preferred_element_type=jnp.float32)
                         + jnp.dot(h[l].astype(jnp.bfloat16), w_hh[l],
                                   preferred_element_type=jnp.float32)
                         + bias[l])
            h[l], c[l] = cell_step(gates, c[l])
        # TODO(synk): inter-layer dropout is identity (eval mode).

    # Final Linear on the last layer's final hidden state (O padded to 128
    # lanes in the wrapper -> unmasked full-vreg store).
    out = (jnp.dot(h[L - 1].astype(jnp.bfloat16), fc_w_ref[...],
                   preferred_element_type=jnp.float32) + fc_b_ref[...])
    out_ref[...] = out.astype(out_ref.dtype)


def lstm_network_forward(x_btd, params):
    """x_btd: (B, T, D_in) batch-first (like PyTorch). Returns (B, output_dim)."""
    B, T, D = x_btd.shape
    L = len(params["lstm"])
    O = params["fc_w"].shape[0]
    H = params["lstm"][0][1].shape[1]
    Bp = 8     # pad batch to one sublane tile (full unmasked rows everywhere)
    Op = 128   # pad fc output to one lane tile (unmasked final store)

    # One-time layout plumbing in the wrapper (tiny XLA ops, outside the kernel):
    #   batch pad -> time-major (T*Bp, D); weights pre-transposed + bf16 cast;
    #   fused LSTM biases; zero-padded fc weight/bias to 128 lanes.
    x_pad = jnp.zeros((Bp, T, D), x_btd.dtype).at[:B].set(x_btd)
    x_tm = jnp.transpose(x_pad, (1, 0, 2)).reshape(T * Bp, D).astype(jnp.bfloat16)

    flat = [x_tm]
    for (w_ih, w_hh, b_ih, b_hh) in params["lstm"]:
        flat.append(jnp.transpose(w_ih).astype(jnp.bfloat16))            # (D_l, 4H)
        flat.append(jnp.transpose(w_hh).astype(jnp.bfloat16))            # (H, 4H)
        flat.append((b_ih + b_hh).reshape(1, -1).astype(jnp.float32))    # (1, 4H)
    fc_w_T = jnp.zeros((H, Op), jnp.float32).at[:, :O].set(
        jnp.transpose(params["fc_w"]))
    fc_b = jnp.zeros((1, Op), jnp.float32).at[:, :O].set(
        params["fc_b"].reshape(1, -1))
    flat.append(fc_w_T.astype(jnp.bfloat16))                             # (H, Op)
    flat.append(fc_b)                                                    # (1, Op)

    kernel = functools.partial(_fused_lstm_kernel, num_layers=L,
                               seq_len=T, batch_pad=Bp)
    vmem = pl.BlockSpec(memory_space=pltpu.MemorySpace.VMEM)
    out_pad = pl.pallas_call(
        kernel,
        out_shape=jax.ShapeDtypeStruct((Bp, Op), jnp.float32),
        in_specs=[vmem] * len(flat),
        out_specs=vmem,
    )(*flat)
    return out_pad[:B, :O].astype(x_btd.dtype)


# --------------------------------------------------------------------------
# Pure-JAX reference for verification (f32 throughout).
# --------------------------------------------------------------------------
def reference_forward(x_btd, params):
    B, T, D = x_btd.shape
    seq = x_btd
    for (w_ih, w_hh, b_ih, b_hh) in params["lstm"]:
        H = w_hh.shape[1]
        h = jnp.zeros((B, H), jnp.float32)
        c = jnp.zeros((B, H), jnp.float32)
        outs = []
        for t in range(seq.shape[1]):
            gates = seq[:, t, :] @ w_ih.T + h @ w_hh.T + b_ih + b_hh
            i = jax.nn.sigmoid(gates[:, 0 * H:1 * H])
            f = jax.nn.sigmoid(gates[:, 1 * H:2 * H])
            g = jnp.tanh(gates[:, 2 * H:3 * H])
            o = jax.nn.sigmoid(gates[:, 3 * H:4 * H])
            c = f * c + i * g
            h = o * jnp.tanh(c)
            outs.append(h)
        seq = jnp.stack(outs, axis=1)
    last = seq[:, -1, :]
    return last @ params["fc_w"].T + params["fc_b"]


# --------------------------------------------------------------------------
# Deterministic parameter init (PyTorch-like uniform(-1/sqrt(H), 1/sqrt(H))).
# --------------------------------------------------------------------------
def init_params(key, input_dim, hidden_dim, output_dim, num_layers):
    params = {"lstm": []}
    bound = 1.0 / jnp.sqrt(hidden_dim)
    for l in range(num_layers):
        d_in = input_dim if l == 0 else hidden_dim
        key, k1, k2, k3, k4 = jax.random.split(key, 5)
        w_ih = jax.random.uniform(k1, (4 * hidden_dim, d_in), jnp.float32, -bound, bound)
        w_hh = jax.random.uniform(k2, (4 * hidden_dim, hidden_dim), jnp.float32, -bound, bound)
        b_ih = jax.random.uniform(k3, (4 * hidden_dim,), jnp.float32, -bound, bound)
        b_hh = jax.random.uniform(k4, (4 * hidden_dim,), jnp.float32, -bound, bound)
        params["lstm"].append((w_ih, w_hh, b_ih, b_hh))
    key, k5, k6 = jax.random.split(key, 3)
    fb = 1.0 / jnp.sqrt(hidden_dim)
    params["fc_w"] = jax.random.uniform(k5, (output_dim, hidden_dim), jnp.float32, -fb, fb)
    params["fc_b"] = jax.random.uniform(k6, (output_dim,), jnp.float32, -fb, fb)
    return params


if __name__ == "__main__":
    # Small shapes consistent with the module: batch=2, seq=8, input_dim=16,
    # hidden_dim=32, output_dim=4, num_layers=2.
    B, T, D_IN, H, O, L = 2, 8, 16, 32, 4, 2

    key = jax.random.PRNGKey(0)
    key, xk = jax.random.split(key)
    x = jax.random.normal(xk, (B, T, D_IN), jnp.float32)

    params = init_params(key, D_IN, H, O, L)

    out = jax.jit(lstm_network_forward)(x, params)
    out = jax.block_until_ready(out)

    ref = reference_forward(x, params)
    assert out.shape == (B, O), out.shape
    # bf16 MXU operands drift slightly from the all-f32 reference.
    assert jnp.allclose(out, ref, atol=2e-2, rtol=2e-2), (
        f"mismatch: max abs err {jnp.max(jnp.abs(out - ref))}")

    print("KERNEL_OK")
</pallas_src>

<mosaic_0001>
module attributes {stable_mosaic.version = 11 : i64} {
  func.func @_fused_lstm_kernel(%arg0: memref<64x16xbf16, #tpu.memory_space<vmem>>, %arg1: memref<16x128xbf16, #tpu.memory_space<vmem>>, %arg2: memref<32x128xbf16, #tpu.memory_space<vmem>>, %arg3: memref<1x128xf32, #tpu.memory_space<vmem>>, %arg4: memref<32x128xbf16, #tpu.memory_space<vmem>>, %arg5: memref<32x128xbf16, #tpu.memory_space<vmem>>, %arg6: memref<1x128xf32, #tpu.memory_space<vmem>>, %arg7: memref<32x128xbf16, #tpu.memory_space<vmem>>, %arg8: memref<1x128xf32, #tpu.memory_space<vmem>>, %arg9: memref<8x128xf32, #tpu.memory_space<vmem>>) attributes {dimension_semantics = [], scalar_prefetch = 0 : i64, scratch_operands = 0 : i64, tpu.core_type = #tpu.core_type<tc>} {
    %c0 = arith.constant 0 : index
    %c0_0 = arith.constant 0 : index
    %0 = vector.load %arg1[%c0, %c0_0] : memref<16x128xbf16, #tpu.memory_space<vmem>>, vector<16x128xbf16>
    %c0_1 = arith.constant 0 : index
    %c0_2 = arith.constant 0 : index
    %1 = vector.load %arg4[%c0_1, %c0_2] : memref<32x128xbf16, #tpu.memory_space<vmem>>, vector<32x128xbf16>
    %c0_3 = arith.constant 0 : index
    %c0_4 = arith.constant 0 : index
    %2 = vector.load %arg2[%c0_3, %c0_4] : memref<32x128xbf16, #tpu.memory_space<vmem>>, vector<32x128xbf16>
    %c0_5 = arith.constant 0 : index
    %c0_6 = arith.constant 0 : index
    %3 = vector.load %arg5[%c0_5, %c0_6] : memref<32x128xbf16, #tpu.memory_space<vmem>>, vector<32x128xbf16>
    %c0_7 = arith.constant 0 : index
    %c0_8 = arith.constant 0 : index
    %4 = vector.load %arg3[%c0_7, %c0_8] : memref<1x128xf32, #tpu.memory_space<vmem>>, vector<1x128xf32>
    %c0_9 = arith.constant 0 : index
    %c0_10 = arith.constant 0 : index
    %5 = vector.load %arg6[%c0_9, %c0_10] : memref<1x128xf32, #tpu.memory_space<vmem>>, vector<1x128xf32>
    %c0_11 = arith.constant 0 : index
    %c0_12 = arith.constant 0 : index
    %6 = vector.load %arg0[%c0_11, %c0_12] : memref<64x16xbf16, #tpu.memory_space<vmem>>, vector<64x16xbf16>
    %cst = arith.constant dense<0.000000e+00> : vector<64x128xf32>
    %7 = tpu.matmul %6, %0, %cst {dimension_numbers = #tpu.dot_dimension_numbers<[1], [0], [0], [1], [0, 0, 1, 1], [], []>} : vector<64x16xbf16>, vector<16x128xbf16>, vector<64x128xf32> -> vector<64x128xf32>
    %8 = vector.broadcast %4 : vector<1x128xf32> to vector<64x128xf32>
    %9 = arith.addf %7, %8 : vector<64x128xf32>
    %10 = tpu.iota {dimensions = array<i32: 1>} : vector<8x128xi32>
    %c64_i32 = arith.constant 64 : i32
    %11 = vector.broadcast %c64_i32 : i32 to vector<8x128xi32>
    %12 = arith.cmpi sge, %10, %11 : vector<8x128xi32>
    %c96_i32 = arith.constant 96 : i32
    %13 = vector.broadcast %c96_i32 : i32 to vector<8x128xi32>
    %14 = arith.cmpi slt, %10, %13 : vector<8x128xi32>
    %15 = arith.andi %12, %14 : vector<8x128xi1>
    %cst_13 = arith.constant 0.000000e+00 : f32
    %16 = vector.broadcast %cst_13 : f32 to vector<8x32xf32>
    %cst_14 = arith.constant 0.000000e+00 : f32
    %17 = vector.broadcast %cst_14 : f32 to vector<8x32xf32>
    %cst_15 = arith.constant 0.000000e+00 : f32
    %18 = vector.broadcast %cst_15 : f32 to vector<8x32xf32>
    %cst_16 = arith.constant 0.000000e+00 : f32
    %19 = vector.broadcast %cst_16 : f32 to vector<8x32xf32>
    %20 = vector.extract_strided_slice %9 {offsets = [0, 0], sizes = [8, 128], strides = [1, 1]} : vector<64x128xf32> to vector<8x128xf32>
    %21 = arith.truncf %16 : vector<8x32xf32> to vector<8x32xbf16>
    %cst_17 = arith.constant dense<0.000000e+00> : vector<8x128xf32>
    %22 = tpu.matmul %21, %2, %cst_17 {dimension_numbers = #tpu.dot_dimension_numbers<[1], [0], [0], [1], [0, 0, 1, 1], [], []>} : vector<8x32xbf16>, vector<32x128xbf16>, vector<8x128xf32> -> vector<8x128xf32>
    %23 = arith.addf %20, %22 : vector<8x128xf32>
    %24 = math.tanh %23 : vector<8x128xf32>
    %25 = arith.negf %23 : vector<8x128xf32>
    %26 = math.exp %25 : vector<8x128xf32>
    %cst_18 = arith.constant 1.000000e+00 : f32
    %27 = vector.broadcast %cst_18 : f32 to vector<8x128xf32>
    %28 = arith.addf %27, %26 : vector<8x128xf32>
    %29 = arith.divf %27, %28 : vector<8x128xf32>
    %30 = arith.select %15, %24, %29 : vector<8x128xi1>, vector<8x128xf32>
    %31 = vector.extract_strided_slice %30 {offsets = [0, 0], sizes = [8, 32], strides = [1, 1]} : vector<8x128xf32> to vector<8x32xf32>
    %32 = vector.extract_strided_slice %30 {offsets = [0, 32], sizes = [8, 32], strides = [1, 1]} : vector<8x128xf32> to vector<8x32xf32>
    %33 = vector.extract_strided_slice %30 {offsets = [0, 64], sizes = [8, 32], strides = [1, 1]} : vector<8x128xf32> to vector<8x32xf32>
    %34 = vector.extract_strided_slice %30 {offsets = [0, 96], sizes = [8, 32], strides = [1, 1]} : vector<8x128xf32> to vector<8x32xf32>
    %35 = arith.mulf %32, %18 : vector<8x32xf32>
    %36 = arith.mulf %31, %33 : vector<8x32xf32>
    %37 = arith.addf %35, %36 : vector<8x32xf32>
    %38 = math.tanh %37 : vector<8x32xf32>
    %39 = arith.mulf %34, %38 : vector<8x32xf32>
    %40 = arith.truncf %39 : vector<8x32xf32> to vector<8x32xbf16>
    %cst_19 = arith.constant dense<0.000000e+00> : vector<8x128xf32>
    %41 = tpu.matmul %40, %1, %cst_19 {dimension_numbers = #tpu.dot_dimension_numbers<[1], [0], [0], [1], [0, 0, 1, 1], [], []>} : vector<8x32xbf16>, vector<32x128xbf16>, vector<8x128xf32> -> vector<8x128xf32>
    %42 = arith.truncf %17 : vector<8x32xf32> to vector<8x32xbf16>
    %cst_20 = arith.constant dense<0.000000e+00> : vector<8x128xf32>
    %43 = tpu.matmul %42, %3, %cst_20 {dimension_numbers = #tpu.dot_dimension_numbers<[1], [0], [0], [1], [0, 0, 1, 1], [], []>} : vector<8x32xbf16>, vector<32x128xbf16>, vector<8x128xf32> -> vector<8x128xf32>
    %44 = arith.addf %41, %43 : vector<8x128xf32>
    %45 = vector.broadcast %5 : vector<1x128xf32> to vector<8x128xf32>
    %46 = arith.addf %44, %45 : vector<8x128xf32>
    %47 = math.tanh %46 : vector<8x128xf32>
    %48 = arith.negf %46 : vector<8x128xf32>
    %49 = math.exp %48 : vector<8x128xf32>
    %cst_21 = arith.constant 1.000000e+00 : f32
    %50 = vector.broadcast %cst_21 : f32 to vector<8x128xf32>
    %51 = arith.addf %50, %49 : vector<8x128xf32>
    %52 = arith.divf %50, %51 : vector<8x128xf32>
    %53 = arith.select %15, %47, %52 : vector<8x128xi1>, vector<8x128xf32>
    %54 = vector.extract_strided_slice %53 {offsets = [0, 0], sizes = [8, 32], strides = [1, 1]} : vector<8x128xf32> to vector<8x32xf32>
    %55 = vector.extract_strided_slice %53 {offsets = [0, 32], sizes = [8, 32], strides = [1, 1]} : vector<8x128xf32> to vector<8x32xf32>
    %56 = vector.extract_strided_slice %53 {offsets = [0, 64], sizes = [8, 32], strides = [1, 1]} : vector<8x128xf32> to vector<8x32xf32>
    %57 = vector.extract_strided_slice %53 {offsets = [0, 96], sizes = [8, 32], strides = [1, 1]} : vector<8x128xf32> to vector<8x32xf32>
    %58 = arith.mulf %55, %19 : vector<8x32xf32>
    %59 = arith.mulf %54, %56 : vector<8x32xf32>
    %60 = arith.addf %58, %59 : vector<8x32xf32>
    %61 = math.tanh %60 : vector<8x32xf32>
    %62 = arith.mulf %57, %61 : vector<8x32xf32>
    %63 = vector.extract_strided_slice %9 {offsets = [8, 0], sizes = [8, 128], strides = [1, 1]} : vector<64x128xf32> to vector<8x128xf32>
    %64 = arith.truncf %39 : vector<8x32xf32> to vector<8x32xbf16>
    %cst_22 = arith.constant dense<0.000000e+00> : vector<8x128xf32>
    %65 = tpu.matmul %64, %2, %cst_22 {dimension_numbers = #tpu.dot_dimension_numbers<[1], [0], [0], [1], [0, 0, 1, 1], [], []>} : vector<8x32xbf16>, vector<32x128xbf16>, vector<8x128xf32> -> vector<8x128xf32>
    %66 = arith.addf %63, %65 : vector<8x128xf32>
    %67 = math.tanh %66 : vector<8x128xf32>
    %68 = arith.negf %66 : vector<8x128xf32>
    %69 = math.exp %68 : vector<8x128xf32>
    %cst_23 = arith.constant 1.000000e+00 : f32
    %70 = vector.broadcast %cst_23 : f32 to vector<8x128xf32>
    %71 = arith.addf %70, %69 : vector<8x128xf32>
    %72 = arith.divf %70, %71 : vector<8x128xf32>
    %73 = arith.select %15, %67, %72 : vector<8x128xi1>, vector<8x128xf32>
    %74 = vector.extract_strided_slice %73 {offsets = [0, 0], sizes = [8, 32], strides = [1, 1]} : vector<8x128xf32> to vector<8x32xf32>
    %75 = vector.extract_strided_slice %73 {offsets = [0, 32], sizes = [8, 32], strides = [1, 1]} : vector<8x128xf32> to vector<8x32xf32>
    %76 = vector.extract_strided_slice %73 {offsets = [0, 64], sizes = [8, 32], strides = [1, 1]} : vector<8x128xf32> to vector<8x32xf32>
    %77 = vector.extract_strided_slice %73 {offsets = [0, 96], sizes = [8, 32], strides = [1, 1]} : vector<8x128xf32> to vector<8x32xf32>
    %78 = arith.mulf %75, %37 : vector<8x32xf32>
    %79 = arith.mulf %74, %76 : vector<8x32xf32>
    %80 = arith.addf %78, %79 : vector<8x32xf32>
    %81 = math.tanh %80 : vector<8x32xf32>
    %82 = arith.mulf %77, %81 : vector<8x32xf32>
    %83 = arith.truncf %82 : vector<8x32xf32> to vector<8x32xbf16>
    %cst_24 = arith.constant dense<0.000000e+00> : vector<8x128xf32>
    %84 = tpu.matmul %83, %1, %cst_24 {dimension_numbers = #tpu.dot_dimension_numbers<[1], [0], [0], [1], [0, 0, 1, 1], [], []>} : vector<8x32xbf16>, vector<32x128xbf16>, vector<8x128xf32> -> vector<8x128xf32>
    %85 = arith.truncf %62 : vector<8x32xf32> to vector<8x32xbf16>
    %cst_25 = arith.constant dense<0.000000e+00> : vector<8x128xf32>
    %86 = tpu.matmul %85, %3, %cst_25 {dimension_numbers = #tpu.dot_dimension_numbers<[1], [0], [0], [1], [0, 0, 1, 1], [], []>} : vector<8x32xbf16>, vector<32x128xbf16>, vector<8x128xf32> -> vector<8x128xf32>
    %87 = arith.addf %84, %86 : vector<8x128xf32>
    %88 = vector.broadcast %5 : vector<1x128xf32> to vector<8x128xf32>
    %89 = arith.addf %87, %88 : vector<8x128xf32>
    %90 = math.tanh %89 : vector<8x128xf32>
    %91 = arith.negf %89 : vector<8x128xf32>
    %92 = math.exp %91 : vector<8x128xf32>
    %cst_26 = arith.constant 1.000000e+00 : f32
    %93 = vector.broadcast %cst_26 : f32 to vector<8x128xf32>
    %94 = arith.addf %93, %92 : vector<8x128xf32>
    %95 = arith.divf %93, %94 : vector<8x128xf32>
    %96 = arith.select %15, %90, %95 : vector<8x128xi1>, vector<8x128xf32>
    %97 = vector.extract_strided_slice %96 {offsets = [0, 0], sizes = [8, 32], strides = [1, 1]} : vector<8x128xf32> to vector<8x32xf32>
    %98 = vector.extract_strided_slice %96 {offsets = [0, 32], sizes = [8, 32], strides = [1, 1]} : vector<8x128xf32> to vector<8x32xf32>
    %99 = vector.extract_strided_slice %96 {offsets = [0, 64], sizes = [8, 32], strides = [1, 1]} : vector<8x128xf32> to vector<8x32xf32>
    %100 = vector.extract_strided_slice %96 {offsets = [0, 96], sizes = [8, 32], strides = [1, 1]} : vector<8x128xf32> to vector<8x32xf32>
    %101 = arith.mulf %98, %60 : vector<8x32xf32>
    %102 = arith.mulf %97, %99 : vector<8x32xf32>
    %103 = arith.addf %101, %102 : vector<8x32xf32>
    %104 = math.tanh %103 : vector<8x32xf32>
    %105 = arith.mulf %100, %104 : vector<8x32xf32>
    %106 = vector.extract_strided_slice %9 {offsets = [16, 0], sizes = [8, 128], strides = [1, 1]} : vector<64x128xf32> to vector<8x128xf32>
    %107 = arith.truncf %82 : vector<8x32xf32> to vector<8x32xbf16>
    %cst_27 = arith.constant dense<0.000000e+00> : vector<8x128xf32>
    %108 = tpu.matmul %107, %2, %cst_27 {dimension_numbers = #tpu.dot_dimension_numbers<[1], [0], [0], [1], [0, 0, 1, 1], [], []>} : vector<8x32xbf16>, vector<32x128xbf16>, vector<8x128xf32> -> vector<8x128xf32>
    %109 = arith.addf %106, %108 : vector<8x128xf32>
    %110 = math.tanh %109 : vector<8x128xf32>
    %111 = arith.negf %109 : vector<8x128xf32>
    %112 = math.exp %111 : vector<8x128xf32>
    %cst_28 = arith.constant 1.000000e+00 : f32
    %113 = vector.broadcast %cst_28 : f32 to vector<8x128xf32>
    %114 = arith.addf %113, %112 : vector<8x128xf32>
    %115 = arith.divf %113, %114 : vector<8x128xf32>
    %116 = arith.select %15, %110, %115 : vector<8x128xi1>, vector<8x128xf32>
    %117 = vector.extract_strided_slice %116 {offsets = [0, 0], sizes = [8, 32], strides = [1, 1]} : vector<8x128xf32> to vector<8x32xf32>
    %118 = vector.extract_strided_slice %116 {offsets = [0, 32], sizes = [8, 32], strides = [1, 1]} : vector<8x128xf32> to vector<8x32xf32>
    %119 = vector.extract_strided_slice %116 {offsets = [0, 64], sizes = [8, 32], strides = [1, 1]} : vector<8x128xf32> to vector<8x32xf32>
    %120 = vector.extract_strided_slice %116 {offsets = [0, 96], sizes = [8, 32], strides = [1, 1]} : vector<8x128xf32> to vector<8x32xf32>
    %121 = arith.mulf %118, %80 : vector<8x32xf32>
    %122 = arith.mulf %117, %119 : vector<8x32xf32>
    %123 = arith.addf %121, %122 : vector<8x32xf32>
    %124 = math.tanh %123 : vector<8x32xf32>
    %125 = arith.mulf %120, %124 : vector<8x32xf32>
    %126 = arith.truncf %125 : vector<8x32xf32> to vector<8x32xbf16>
    %cst_29 = arith.constant dense<0.000000e+00> : vector<8x128xf32>
    %127 = tpu.matmul %126, %1, %cst_29 {dimension_numbers = #tpu.dot_dimension_numbers<[1], [0], [0], [1], [0, 0, 1, 1], [], []>} : vector<8x32xbf16>, vector<32x128xbf16>, vector<8x128xf32> -> vector<8x128xf32>
    %128 = arith.truncf %105 : vector<8x32xf32> to vector<8x32xbf16>
    %cst_30 = arith.constant dense<0.000000e+00> : vector<8x128xf32>
    %129 = tpu.matmul %128, %3, %cst_30 {dimension_numbers = #tpu.dot_dimension_numbers<[1], [0], [0], [1], [0, 0, 1, 1], [], []>} : vector<8x32xbf16>, vector<32x128xbf16>, vector<8x128xf32> -> vector<8x128xf32>
    %130 = arith.addf %127, %129 : vector<8x128xf32>
    %131 = vector.broadcast %5 : vector<1x128xf32> to vector<8x128xf32>
    %132 = arith.addf %130, %131 : vector<8x128xf32>
    %133 = math.tanh %132 : vector<8x128xf32>
    %134 = arith.negf %132 : vector<8x128xf32>
    %135 = math.exp %134 : vector<8x128xf32>
    %cst_31 = arith.constant 1.000000e+00 : f32
    %136 = vector.broadcast %cst_31 : f32 to vector<8x128xf32>
    %137 = arith.addf %136, %135 : vector<8x128xf32>
    %138 = arith.divf %136, %137 : vector<8x128xf32>
    %139 = arith.select %15, %133, %138 : vector<8x128xi1>, vector<8x128xf32>
    %140 = vector.extract_strided_slice %139 {offsets = [0, 0], sizes = [8, 32], strides = [1, 1]} : vector<8x128xf32> to vector<8x32xf32>
    %141 = vector.extract_strided_slice %139 {offsets = [0, 32], sizes = [8, 32], strides = [1, 1]} : vector<8x128xf32> to vector<8x32xf32>
    %142 = vector.extract_strided_slice %139 {offsets = [0, 64], sizes = [8, 32], strides = [1, 1]} : vector<8x128xf32> to vector<8x32xf32>
    %143 = vector.extract_strided_slice %139 {offsets = [0, 96], sizes = [8, 32], strides = [1, 1]} : vector<8x128xf32> to vector<8x32xf32>
    %144 = arith.mulf %141, %103 : vector<8x32xf32>
    %145 = arith.mulf %140, %142 : vector<8x32xf32>
    %146 = arith.addf %144, %145 : vector<8x32xf32>
    %147 = math.tanh %146 : vector<8x32xf32>
    %148 = arith.mulf %143, %147 : vector<8x32xf32>
    %149 = vector.extract_strided_slice %9 {offsets = [24, 0], sizes = [8, 128], strides = [1, 1]} : vector<64x128xf32> to vector<8x128xf32>
    %150 = arith.truncf %125 : vector<8x32xf32> to vector<8x32xbf16>
    %cst_32 = arith.constant dense<0.000000e+00> : vector<8x128xf32>
    %151 = tpu.matmul %150, %2, %cst_32 {dimension_numbers = #tpu.dot_dimension_numbers<[1], [0], [0], [1], [0, 0, 1, 1], [], []>} : vector<8x32xbf16>, vector<32x128xbf16>, vector<8x128xf32> -> vector<8x128xf32>
    %152 = arith.addf %149, %151 : vector<8x128xf32>
    %153 = math.tanh %152 : vector<8x128xf32>
    %154 = arith.negf %152 : vector<8x128xf32>
    %155 = math.exp %154 : vector<8x128xf32>
    %cst_33 = arith.constant 1.000000e+00 : f32
    %156 = vector.broadcast %cst_33 : f32 to vector<8x128xf32>
    %157 = arith.addf %156, %155 : vector<8x128xf32>
    %158 = arith.divf %156, %157 : vector<8x128xf32>
    %159 = arith.select %15, %153, %158 : vector<8x128xi1>, vector<8x128xf32>
    %160 = vector.extract_strided_slice %159 {offsets = [0, 0], sizes = [8, 32], strides = [1, 1]} : vector<8x128xf32> to vector<8x32xf32>
    %161 = vector.extract_strided_slice %159 {offsets = [0, 32], sizes = [8, 32], strides = [1, 1]} : vector<8x128xf32> to vector<8x32xf32>
    %162 = vector.extract_strided_slice %159 {offsets = [0, 64], sizes = [8, 32], strides = [1, 1]} : vector<8x128xf32> to vector<8x32xf32>
    %163 = vector.extract_strided_slice %159 {offsets = [0, 96], sizes = [8, 32], strides = [1, 1]} : vector<8x128xf32> to vector<8x32xf32>
    %164 = arith.mulf %161, %123 : vector<8x32xf32>
    %165 = arith.mulf %160, %162 : vector<8x32xf32>
    %166 = arith.addf %164, %165 : vector<8x32xf32>
    %167 = math.tanh %166 : vector<8x32xf32>
    %168 = arith.mulf %163, %167 : vector<8x32xf32>
    %169 = arith.truncf %168 : vector<8x32xf32> to vector<8x32xbf16>
    %cst_34 = arith.constant dense<0.000000e+00> : vector<8x128xf32>
    %170 = tpu.matmul %169, %1, %cst_34 {dimension_numbers = #tpu.dot_dimension_numbers<[1], [0], [0], [1], [0, 0, 1, 1], [], []>} : vector<8x32xbf16>, vector<32x128xbf16>, vector<8x128xf32> -> vector<8x128xf32>
    %171 = arith.truncf %148 : vector<8x32xf32> to vector<8x32xbf16>
    %cst_35 = arith.constant dense<0.000000e+00> : vector<8x128xf32>
    %172 = tpu.matmul %171, %3, %cst_35 {dimension_numbers = #tpu.dot_dimension_numbers<[1], [0], [0], [1], [0, 0, 1, 1], [], []>} : vector<8x32xbf16>, vector<32x128xbf16>, vector<8x128xf32> -> vector<8x128xf32>
    %173 = arith.addf %170, %172 : vector<8x128xf32>
    %174 = vector.broadcast %5 : vector<1x128xf32> to vector<8x128xf32>
    %175 = arith.addf %173, %174 : vector<8x128xf32>
    %176 = math.tanh %175 : vector<8x128xf32>
    %177 = arith.negf %175 : vector<8x128xf32>
    %178 = math.exp %177 : vector<8x128xf32>
    %cst_36 = arith.constant 1.000000e+00 : f32
    %179 = vector.broadcast %cst_36 : f32 to vector<8x128xf32>
    %180 = arith.addf %179, %178 : vector<8x128xf32>
    %181 = arith.divf %179, %180 : vector<8x128xf32>
    %182 = arith.select %15, %176, %181 : vector<8x128xi1>, vector<8x128xf32>
    %183 = vector.extract_strided_slice %182 {offsets = [0, 0], sizes = [8, 32], strides = [1, 1]} : vector<8x128xf32> to vector<8x32xf32>
    %184 = vector.extract_strided_slice %182 {offsets = [0, 32], sizes = [8, 32], strides = [1, 1]} : vector<8x128xf32> to vector<8x32xf32>
    %185 = vector.extract_strided_slice %182 {offsets = [0, 64], sizes = [8, 32], strides = [1, 1]} : vector<8x128xf32> to vector<8x32xf32>
    %186 = vector.extract_strided_slice %182 {offsets = [0, 96], sizes = [8, 32], strides = [1, 1]} : vector<8x128xf32> to vector<8x32xf32>
    %187 = arith.mulf %184, %146 : vector<8x32xf32>
    %188 = arith.mulf %183, %185 : vector<8x32xf32>
    %189 = arith.addf %187, %188 : vector<8x32xf32>
    %190 = math.tanh %189 : vector<8x32xf32>
    %191 = arith.mulf %186, %190 : vector<8x32xf32>
    %192 = vector.extract_strided_slice %9 {offsets = [32, 0], sizes = [8, 128], strides = [1, 1]} : vector<64x128xf32> to vector<8x128xf32>
    %193 = arith.truncf %168 : vector<8x32xf32> to vector<8x32xbf16>
    %cst_37 = arith.constant dense<0.000000e+00> : vector<8x128xf32>
    %194 = tpu.matmul %193, %2, %cst_37 {dimension_numbers = #tpu.dot_dimension_numbers<[1], [0], [0], [1], [0, 0, 1, 1], [], []>} : vector<8x32xbf16>, vector<32x128xbf16>, vector<8x128xf32> -> vector<8x128xf32>
    %195 = arith.addf %192, %194 : vector<8x128xf32>
    %196 = math.tanh %195 : vector<8x128xf32>
    %197 = arith.negf %195 : vector<8x128xf32>
    %198 = math.exp %197 : vector<8x128xf32>
    %cst_38 = arith.constant 1.000000e+00 : f32
    %199 = vector.broadcast %cst_38 : f32 to vector<8x128xf32>
    %200 = arith.addf %199, %198 : vector<8x128xf32>
    %201 = arith.divf %199, %200 : vector<8x128xf32>
    %202 = arith.select %15, %196, %201 : vector<8x128xi1>, vector<8x128xf32>
    %203 = vector.extract_strided_slice %202 {offsets = [0, 0], sizes = [8, 32], strides = [1, 1]} : vector<8x128xf32> to vector<8x32xf32>
    %204 = vector.extract_strided_slice %202 {offsets = [0, 32], sizes = [8, 32], strides = [1, 1]} : vector<8x128xf32> to vector<8x32xf32>
    %205 = vector.extract_strided_slice %202 {offsets = [0, 64], sizes = [8, 32], strides = [1, 1]} : vector<8x128xf32> to vector<8x32xf32>
    %206 = vector.extract_strided_slice %202 {offsets = [0, 96], sizes = [8, 32], strides = [1, 1]} : vector<8x128xf32> to vector<8x32xf32>
    %207 = arith.mulf %204, %166 : vector<8x32xf32>
    %208 = arith.mulf %203, %205 : vector<8x32xf32>
    %209 = arith.addf %207, %208 : vector<8x32xf32>
    %210 = math.tanh %209 : vector<8x32xf32>
    %211 = arith.mulf %206, %210 : vector<8x32xf32>
    %212 = arith.truncf %211 : vector<8x32xf32> to vector<8x32xbf16>
    %cst_39 = arith.constant dense<0.000000e+00> : vector<8x128xf32>
    %213 = tpu.matmul %212, %1, %cst_39 {dimension_numbers = #tpu.dot_dimension_numbers<[1], [0], [0], [1], [0, 0, 1, 1], [], []>} : vector<8x32xbf16>, vector<32x128xbf16>, vector<8x128xf32> -> vector<8x128xf32>
    %214 = arith.truncf %191 : vector<8x32xf32> to vector<8x32xbf16>
    %cst_40 = arith.constant dense<0.000000e+00> : vector<8x128xf32>
    %215 = tpu.matmul %214, %3, %cst_40 {dimension_numbers = #tpu.dot_dimension_numbers<[1], [0], [0], [1], [0, 0, 1, 1], [], []>} : vector<8x32xbf16>, vector<32x128xbf16>, vector<8x128xf32> -> vector<8x128xf32>
    %216 = arith.addf %213, %215 : vector<8x128xf32>
    %217 = vector.broadcast %5 : vector<1x128xf32> to vector<8x128xf32>
    %218 = arith.addf %216, %217 : vector<8x128xf32>
    %219 = math.tanh %218 : vector<8x128xf32>
    %220 = arith.negf %218 : vector<8x128xf32>
    %221 = math.exp %220 : vector<8x128xf32>
    %cst_41 = arith.constant 1.000000e+00 : f32
    %222 = vector.broadcast %cst_41 : f32 to vector<8x128xf32>
    %223 = arith.addf %222, %221 : vector<8x128xf32>
    %224 = arith.divf %222, %223 : vector<8x128xf32>
    %225 = arith.select %15, %219, %224 : vector<8x128xi1>, vector<8x128xf32>
    %226 = vector.extract_strided_slice %225 {offsets = [0, 0], sizes = [8, 32], strides = [1, 1]} : vector<8x128xf32> to vector<8x32xf32>
    %227 = vector.extract_strided_slice %225 {offsets = [0, 32], sizes = [8, 32], strides = [1, 1]} : vector<8x128xf32> to vector<8x32xf32>
    %228 = vector.extract_strided_slice %225 {offsets = [0, 64], sizes = [8, 32], strides = [1, 1]} : vector<8x128xf32> to vector<8x32xf32>
    %229 = vector.extract_strided_slice %225 {offsets = [0, 96], sizes = [8, 32], strides = [1, 1]} : vector<8x128xf32> to vector<8x32xf32>
    %230 = arith.mulf %227, %189 : vector<8x32xf32>
    %231 = arith.mulf %226, %228 : vector<8x32xf32>
    %232 = arith.addf %230, %231 : vector<8x32xf32>
    %233 = math.tanh %232 : vector<8x32xf32>
    %234 = arith.mulf %229, %233 : vector<8x32xf32>
    %235 = vector.extract_strided_slice %9 {offsets = [40, 0], sizes = [8, 128], strides = [1, 1]} : vector<64x128xf32> to vector<8x128xf32>
    %236 = arith.truncf %211 : vector<8x32xf32> to vector<8x32xbf16>
    %cst_42 = arith.constant dense<0.000000e+00> : vector<8x128xf32>
    %237 = tpu.matmul %236, %2, %cst_42 {dimension_numbers = #tpu.dot_dimension_numbers<[1], [0], [0], [1], [0, 0, 1, 1], [], []>} : vector<8x32xbf16>, vector<32x128xbf16>, vector<8x128xf32> -> vector<8x128xf32>
    %238 = arith.addf %235, %237 : vector<8x128xf32>
    %239 = math.tanh %238 : vector<8x128xf32>
    %240 = arith.negf %238 : vector<8x128xf32>
    %241 = math.exp %240 : vector<8x128xf32>
    %cst_43 = arith.constant 1.000000e+00 : f32
    %242 = vector.broadcast %cst_43 : f32 to vector<8x128xf32>
    %243 = arith.addf %242, %241 : vector<8x128xf32>
    %244 = arith.divf %242, %243 : vector<8x128xf32>
    %245 = arith.select %15, %239, %244 : vector<8x128xi1>, vector<8x128xf32>
    %246 = vector.extract_strided_slice %245 {offsets = [0, 0], sizes = [8, 32], strides = [1, 1]} : vector<8x128xf32> to vector<8x32xf32>
    %247 = vector.extract_strided_slice %245 {offsets = [0, 32], sizes = [8, 32], strides = [1, 1]} : vector<8x128xf32> to vector<8x32xf32>
    %248 = vector.extract_strided_slice %245 {offsets = [0, 64], sizes = [8, 32], strides = [1, 1]} : vector<8x128xf32> to vector<8x32xf32>
    %249 = vector.extract_strided_slice %245 {offsets = [0, 96], sizes = [8, 32], strides = [1, 1]} : vector<8x128xf32> to vector<8x32xf32>
    %250 = arith.mulf %247, %209 : vector<8x32xf32>
    %251 = arith.mulf %246, %248 : vector<8x32xf32>
    %252 = arith.addf %250, %251 : vector<8x32xf32>
    %253 = math.tanh %252 : vector<8x32xf32>
    %254 = arith.mulf %249, %253 : vector<8x32xf32>
    %255 = arith.truncf %254 : vector<8x32xf32> to vector<8x32xbf16>
    %cst_44 = arith.constant dense<0.000000e+00> : vector<8x128xf32>
    %256 = tpu.matmul %255, %1, %cst_44 {dimension_numbers = #tpu.dot_dimension_numbers<[1], [0], [0], [1], [0, 0, 1, 1], [], []>} : vector<8x32xbf16>, vector<32x128xbf16>, vector<8x128xf32> -> vector<8x128xf32>
    %257 = arith.truncf %234 : vector<8x32xf32> to vector<8x32xbf16>
    %cst_45 = arith.constant dense<0.000000e+00> : vector<8x128xf32>
    %258 = tpu.matmul %257, %3, %cst_45 {dimension_numbers = #tpu.dot_dimension_numbers<[1], [0], [0], [1], [0, 0, 1, 1], [], []>} : vector<8x32xbf16>, vector<32x128xbf16>, vector<8x128xf32> -> vector<8x128xf32>
    %259 = arith.addf %256, %258 : vector<8x128xf32>
    %260 = vector.broadcast %5 : vector<1x128xf32> to vector<8x128xf32>
    %261 = arith.addf %259, %260 : vector<8x128xf32>
    %262 = math.tanh %261 : vector<8x128xf32>
    %263 = arith.negf %261 : vector<8x128xf32>
    %264 = math.exp %263 : vector<8x128xf32>
    %cst_46 = arith.constant 1.000000e+00 : f32
    %265 = vector.broadcast %cst_46 : f32 to vector<8x128xf32>
    %266 = arith.addf %265, %264 : vector<8x128xf32>
    %267 = arith.divf %265, %266 : vector<8x128xf32>
    %268 = arith.select %15, %262, %267 : vector<8x128xi1>, vector<8x128xf32>
    %269 = vector.extract_strided_slice %268 {offsets = [0, 0], sizes = [8, 32], strides = [1, 1]} : vector<8x128xf32> to vector<8x32xf32>
    %270 = vector.extract_strided_slice %268 {offsets = [0, 32], sizes = [8, 32], strides = [1, 1]} : vector<8x128xf32> to vector<8x32xf32>
    %271 = vector.extract_strided_slice %268 {offsets = [0, 64], sizes = [8, 32], strides = [1, 1]} : vector<8x128xf32> to vector<8x32xf32>
    %272 = vector.extract_strided_slice %268 {offsets = [0, 96], sizes = [8, 32], strides = [1, 1]} : vector<8x128xf32> to vector<8x32xf32>
    %273 = arith.mulf %270, %232 : vector<8x32xf32>
    %274 = arith.mulf %269, %271 : vector<8x32xf32>
    %275 = arith.addf %273, %274 : vector<8x32xf32>
    %276 = math.tanh %275 : vector<8x32xf32>
    %277 = arith.mulf %272, %276 : vector<8x32xf32>
    %278 = vector.extract_strided_slice %9 {offsets = [48, 0], sizes = [8, 128], strides = [1, 1]} : vector<64x128xf32> to vector<8x128xf32>
    %279 = arith.truncf %254 : vector<8x32xf32> to vector<8x32xbf16>
    %cst_47 = arith.constant dense<0.000000e+00> : vector<8x128xf32>
    %280 = tpu.matmul %279, %2, %cst_47 {dimension_numbers = #tpu.dot_dimension_numbers<[1], [0], [0], [1], [0, 0, 1, 1], [], []>} : vector<8x32xbf16>, vector<32x128xbf16>, vector<8x128xf32> -> vector<8x128xf32>
    %281 = arith.addf %278, %280 : vector<8x128xf32>
    %282 = math.tanh %281 : vector<8x128xf32>
    %283 = arith.negf %281 : vector<8x128xf32>
    %284 = math.exp %283 : vector<8x128xf32>
    %cst_48 = arith.constant 1.000000e+00 : f32
    %285 = vector.broadcast %cst_48 : f32 to vector<8x128xf32>
    %286 = arith.addf %285, %284 : vector<8x128xf32>
    %287 = arith.divf %285, %286 : vector<8x128xf32>
    %288 = arith.select %15, %282, %287 : vector<8x128xi1>, vector<8x128xf32>
    %289 = vector.extract_strided_slice %288 {offsets = [0, 0], sizes = [8, 32], strides = [1, 1]} : vector<8x128xf32> to vector<8x32xf32>
    %290 = vector.extract_strided_slice %288 {offsets = [0, 32], sizes = [8, 32], strides = [1, 1]} : vector<8x128xf32> to vector<8x32xf32>
    %291 = vector.extract_strided_slice %288 {offsets = [0, 64], sizes = [8, 32], strides = [1, 1]} : vector<8x128xf32> to vector<8x32xf32>
    %292 = vector.extract_strided_slice %288 {offsets = [0, 96], sizes = [8, 32], strides = [1, 1]} : vector<8x128xf32> to vector<8x32xf32>
    %293 = arith.mulf %290, %252 : vector<8x32xf32>
    %294 = arith.mulf %289, %291 : vector<8x32xf32>
    %295 = arith.addf %293, %294 : vector<8x32xf32>
    %296 = math.tanh %295 : vector<8x32xf32>
    %297 = arith.mulf %292, %296 : vector<8x32xf32>
    %298 = arith.truncf %297 : vector<8x32xf32> to vector<8x32xbf16>
    %cst_49 = arith.constant dense<0.000000e+00> : vector<8x128xf32>
    %299 = tpu.matmul %298, %1, %cst_49 {dimension_numbers = #tpu.dot_dimension_numbers<[1], [0], [0], [1], [0, 0, 1, 1], [], []>} : vector<8x32xbf16>, vector<32x128xbf16>, vector<8x128xf32> -> vector<8x128xf32>
    %300 = arith.truncf %277 : vector<8x32xf32> to vector<8x32xbf16>
    %cst_50 = arith.constant dense<0.000000e+00> : vector<8x128xf32>
    %301 = tpu.matmul %300, %3, %cst_50 {dimension_numbers = #tpu.dot_dimension_numbers<[1], [0], [0], [1], [0, 0, 1, 1], [], []>} : vector<8x32xbf16>, vector<32x128xbf16>, vector<8x128xf32> -> vector<8x128xf32>
    %302 = arith.addf %299, %301 : vector<8x128xf32>
    %303 = vector.broadcast %5 : vector<1x128xf32> to vector<8x128xf32>
    %304 = arith.addf %302, %303 : vector<8x128xf32>
    %305 = math.tanh %304 : vector<8x128xf32>
    %306 = arith.negf %304 : vector<8x128xf32>
    %307 = math.exp %306 : vector<8x128xf32>
    %cst_51 = arith.constant 1.000000e+00 : f32
    %308 = vector.broadcast %cst_51 : f32 to vector<8x128xf32>
    %309 = arith.addf %308, %307 : vector<8x128xf32>
    %310 = arith.divf %308, %309 : vector<8x128xf32>
    %311 = arith.select %15, %305, %310 : vector<8x128xi1>, vector<8x128xf32>
    %312 = vector.extract_strided_slice %311 {offsets = [0, 0], sizes = [8, 32], strides = [1, 1]} : vector<8x128xf32> to vector<8x32xf32>
    %313 = vector.extract_strided_slice %311 {offsets = [0, 32], sizes = [8, 32], strides = [1, 1]} : vector<8x128xf32> to vector<8x32xf32>
    %314 = vector.extract_strided_slice %311 {offsets = [0, 64], sizes = [8, 32], strides = [1, 1]} : vector<8x128xf32> to vector<8x32xf32>
    %315 = vector.extract_strided_slice %311 {offsets = [0, 96], sizes = [8, 32], strides = [1, 1]} : vector<8x128xf32> to vector<8x32xf32>
    %316 = arith.mulf %313, %275 : vector<8x32xf32>
    %317 = arith.mulf %312, %314 : vector<8x32xf32>
    %318 = arith.addf %316, %317 : vector<8x32xf32>
    %319 = math.tanh %318 : vector<8x32xf32>
    %320 = arith.mulf %315, %319 : vector<8x32xf32>
    %321 = vector.extract_strided_slice %9 {offsets = [56, 0], sizes = [8, 128], strides = [1, 1]} : vector<64x128xf32> to vector<8x128xf32>
    %322 = arith.truncf %297 : vector<8x32xf32> to vector<8x32xbf16>
    %cst_52 = arith.constant dense<0.000000e+00> : vector<8x128xf32>
    %323 = tpu.matmul %322, %2, %cst_52 {dimension_numbers = #tpu.dot_dimension_numbers<[1], [0], [0], [1], [0, 0, 1, 1], [], []>} : vector<8x32xbf16>, vector<32x128xbf16>, vector<8x128xf32> -> vector<8x128xf32>
    %324 = arith.addf %321, %323 : vector<8x128xf32>
    %325 = math.tanh %324 : vector<8x128xf32>
    %326 = arith.negf %324 : vector<8x128xf32>
    %327 = math.exp %326 : vector<8x128xf32>
    %cst_53 = arith.constant 1.000000e+00 : f32
    %328 = vector.broadcast %cst_53 : f32 to vector<8x128xf32>
    %329 = arith.addf %328, %327 : vector<8x128xf32>
    %330 = arith.divf %328, %329 : vector<8x128xf32>
    %331 = arith.select %15, %325, %330 : vector<8x128xi1>, vector<8x128xf32>
    %332 = vector.extract_strided_slice %331 {offsets = [0, 0], sizes = [8, 32], strides = [1, 1]} : vector<8x128xf32> to vector<8x32xf32>
    %333 = vector.extract_strided_slice %331 {offsets = [0, 32], sizes = [8, 32], strides = [1, 1]} : vector<8x128xf32> to vector<8x32xf32>
    %334 = vector.extract_strided_slice %331 {offsets = [0, 64], sizes = [8, 32], strides = [1, 1]} : vector<8x128xf32> to vector<8x32xf32>
    %335 = vector.extract_strided_slice %331 {offsets = [0, 96], sizes = [8, 32], strides = [1, 1]} : vector<8x128xf32> to vector<8x32xf32>
    %336 = arith.mulf %333, %295 : vector<8x32xf32>
    %337 = arith.mulf %332, %334 : vector<8x32xf32>
    %338 = arith.addf %336, %337 : vector<8x32xf32>
    %339 = math.tanh %338 : vector<8x32xf32>
    %340 = arith.mulf %335, %339 : vector<8x32xf32>
    %341 = arith.truncf %340 : vector<8x32xf32> to vector<8x32xbf16>
    %cst_54 = arith.constant dense<0.000000e+00> : vector<8x128xf32>
    %342 = tpu.matmul %341, %1, %cst_54 {dimension_numbers = #tpu.dot_dimension_numbers<[1], [0], [0], [1], [0, 0, 1, 1], [], []>} : vector<8x32xbf16>, vector<32x128xbf16>, vector<8x128xf32> -> vector<8x128xf32>
    %343 = arith.truncf %320 : vector<8x32xf32> to vector<8x32xbf16>
    %cst_55 = arith.constant dense<0.000000e+00> : vector<8x128xf32>
    %344 = tpu.matmul %343, %3, %cst_55 {dimension_numbers = #tpu.dot_dimension_numbers<[1], [0], [0], [1], [0, 0, 1, 1], [], []>} : vector<8x32xbf16>, vector<32x128xbf16>, vector<8x128xf32> -> vector<8x128xf32>
    %345 = arith.addf %342, %344 : vector<8x128xf32>
    %346 = vector.broadcast %5 : vector<1x128xf32> to vector<8x128xf32>
    %347 = arith.addf %345, %346 : vector<8x128xf32>
    %348 = math.tanh %347 : vector<8x128xf32>
    %349 = arith.negf %347 : vector<8x128xf32>
    %350 = math.exp %349 : vector<8x128xf32>
    %cst_56 = arith.constant 1.000000e+00 : f32
    %351 = vector.broadcast %cst_56 : f32 to vector<8x128xf32>
    %352 = arith.addf %351, %350 : vector<8x128xf32>
    %353 = arith.divf %351, %352 : vector<8x128xf32>
    %354 = arith.select %15, %348, %353 : vector<8x128xi1>, vector<8x128xf32>
    %355 = vector.extract_strided_slice %354 {offsets = [0, 0], sizes = [8, 32], strides = [1, 1]} : vector<8x128xf32> to vector<8x32xf32>
    %356 = vector.extract_strided_slice %354 {offsets = [0, 32], sizes = [8, 32], strides = [1, 1]} : vector<8x128xf32> to vector<8x32xf32>
    %357 = vector.extract_strided_slice %354 {offsets = [0, 64], sizes = [8, 32], strides = [1, 1]} : vector<8x128xf32> to vector<8x32xf32>
    %358 = vector.extract_strided_slice %354 {offsets = [0, 96], sizes = [8, 32], strides = [1, 1]} : vector<8x128xf32> to vector<8x32xf32>
    %359 = arith.mulf %356, %318 : vector<8x32xf32>
    %360 = arith.mulf %355, %357 : vector<8x32xf32>
    %361 = arith.addf %359, %360 : vector<8x32xf32>
    %362 = math.tanh %361 : vector<8x32xf32>
    %363 = arith.mulf %358, %362 : vector<8x32xf32>
    %364 = arith.truncf %363 : vector<8x32xf32> to vector<8x32xbf16>
    %c0_57 = arith.constant 0 : index
    %c0_58 = arith.constant 0 : index
    %365 = vector.load %arg7[%c0_57, %c0_58] : memref<32x128xbf16, #tpu.memory_space<vmem>>, vector<32x128xbf16>
    %cst_59 = arith.constant dense<0.000000e+00> : vector<8x128xf32>
    %366 = tpu.matmul %364, %365, %cst_59 {dimension_numbers = #tpu.dot_dimension_numbers<[1], [0], [0], [1], [0, 0, 1, 1], [], []>} : vector<8x32xbf16>, vector<32x128xbf16>, vector<8x128xf32> -> vector<8x128xf32>
    %c0_60 = arith.constant 0 : index
    %c0_61 = arith.constant 0 : index
    %367 = vector.load %arg8[%c0_60, %c0_61] : memref<1x128xf32, #tpu.memory_space<vmem>>, vector<1x128xf32>
    %368 = vector.broadcast %367 : vector<1x128xf32> to vector<8x128xf32>
    %369 = arith.addf %366, %368 : vector<8x128xf32>
    %c0_62 = arith.constant 0 : index
    %c0_63 = arith.constant 0 : index
    %370 = vector.load %arg9[%c0_62, %c0_63] : memref<8x128xf32, #tpu.memory_space<vmem>>, vector<8x128xf32>
    tpu.vector_store %arg9[%c0_62, %c0_63], %369 {strides = array<i32>} : memref<8x128xf32, #tpu.memory_space<vmem>>, vector<8x128xf32>,
    return
  }
}

</mosaic_0001>

<bundles_post_ra>
// kernel: lstm_network_forward.1
= control target key start
LH: loop header
LB: loop body
LE: loop exit
PB: predicated region body
PF: predicated region fallthrough
CT: control target
= control target key end

     0   :  { %v2277_v0 = vmov 0.0   ;;  %vm2278_vm0 = vmmov 0   ;;  %vm89_vm1 = vcmask 130048   ;;  %v2279_v6 = vmov 0   ;;  %s2280_s20 = smov 64   ;;  %s2281_s21 = smov 32   ;;  %s2785_s1 = inlined_call_operand.vmem [shape: bf16[16,128], index: 1, kind: input, shape index: {}]   ;;  %s2786_s2 = inlined_call_operand.vmem [shape: bf16[32,128], index: 2, kind: input, shape index: {}]   ;;  %s2787_s0 = inlined_call_operand.vmem [shape: bf16[64,16], index: 0, kind: input, shape index: {}]   ;;  %s2788_s3 = inlined_call_operand.vmem [shape: f32[1,128], index: 3, kind: input, shape index: {}]   ;;  %s2789_s5 = inlined_call_operand.vmem [shape: bf16[32,128], index: 5, kind: input, shape index: {}]   ;;  %s2790_s4 = inlined_call_operand.vmem [shape: bf16[32,128], index: 4, kind: input, shape index: {}]   ;;  %s2791_s6 = inlined_call_operand.vmem [shape: f32[1,128], index: 6, kind: input, shape index: {}]   ;;  %s2792_s7 = inlined_call_operand.vmem [shape: bf16[32,128], index: 7, kind: input, shape index: {}]   ;;  %s2793_s8 = inlined_call_operand.vmem [shape: f32[1,128], index: 8, kind: input, shape index: {}]   ;;  %s2794_s9 = inlined_call_operand.vmem [shape: f32[8,128], index: 9, kind: output, shape index: {}]  }
   0x1   :  { %1923 = vmatprep.subr.bf16.mxu1 %v2277_v0  ;;  %v2128_v1 = vld [vmem:[%s2785_s1] sm:$0xff]   ;;  %1927 = vmatprep.mubr.msk.bf16.mxu1 %vm2278_vm0, %v2277_v0  ;;  %v2131_v4 = vld [vmem:[%s2787_s0 + $0x8] sm:$0xff]   ;;  %v167_v20 = vlaneseq  ;;  %v2135_v32 = vld [vmem:[%s2787_s0 + $0x10] sm:$0xff]   ;;  %vm184_vm5 = vcmask 261120  }
   0x2   :  { %v2341_v2 = vld [vmem:[%s2786_s2] sm:$0xff]   ;;  %1913 = vmatprep.subr.bf16.mxu0 %v2128_v1  ;;  %v2355_v5 = vld [vmem:[%s2786_s2 + $0x8] sm:$0xff]   ;;  %v2137_v33 = vld [vmem:[%s2787_s0 + $0x18] sm:$0xff]  }
   0x3   :  { %v2130_v3 = vld [vmem:[%s2787_s0] sm:$0xff]   ;;  %1924 = vmatpush3.bf16.msra.mxu1 %v2341_v2  ;;  %1914 = vmatpush3.bf16.msra.mxu0 %v2128_v1  ;;  %v168_v22 = vand.u32 127, %v167_v20  ;;  %v2407_v36 = vld [vmem:[%s2789_s5 + $0x8] sm:$0xff]  }
   0x4   :  { %1915 = vmatprep.mubr.msk.bf16.mxu0 %vm89_vm1, %v2130_v3  ;;  %1925 = vmatprep.subr.bf16.mxu1 %v2277_v0  ;;  %v2366_v7 = vld [vmem:[%s2788_s3] ss:$0 sm:$0xff]  ;;  %v2415_v37 = vld [vmem:[%s2790_s4 + $0x8] sm:$0xff]  }
   0x5   :  { %1939 = vmatprep.subr.bf16.mxu0 %v2277_v0  ;;  %vm169_vm2 = vcmp.ge.s32.totalorder %v168_v22, 64  ;;  %vm170_vm3 = vcmp.lt.s32.totalorder %v168_v22, 96  ;;  %v2395_v34 = vld [vmem:[%s2789_s5] sm:$0xff]   ;;  %v2140_v23 = vld [vmem:[%s2792_s7 + $0x8] sm:$0xff]  }
   0x6   :  { %1916 = vmatmul.mubr.msk.bf16.vlgmr.msra.gmra.mrb[0].mxu0 %vm89_vm1, %v2131_v4  ;;  %vm2375_vm4 = vmand %vm169_vm2, %vm170_vm3  ;;  %v2400_v35 = vld [vmem:[%s2790_s4] sm:$0xff]  }
   0x7   :  { %1926 = vmatpush3.bf16.msra.mxu1 %v2355_v5  ;;  %1919 = vmatprep.mubr.msk.bf16.mxu0 %vm89_vm1, %v2135_v32  ;;  %v2459_v52 = vld [vmem:[%s2791_s6] ss:$0 sm:$0xff] }
   0x8   :  { %1931 = vmatprep.subr.bf16.mxu1 %v2277_v0  ;;  %1940 = vmatpush3.bf16.msra.mxu0 %v2400_v35 }
   0x9   :  { %1941 = vmatprep.subr.bf16.mxu0 %v2277_v0 }
   0xa   :  { %1928 = vmatmul.mubr.bf16.vlgmr.msra.gmra.mrb[0].mxu1 %v2279_v6 }
   0xb   :  { %1935 = vmatprep.mubr.msk.bf16.mxu1 %vm2278_vm0, %v2277_v0  ;;  %1932 = vmatpush3.bf16.msra.mxu1 %v2395_v34 }
   0xc   :  { %1933 = vmatprep.subr.bf16.mxu1 %v2277_v0  ;;  %1942 = vmatpush3.bf16.msra.mxu0 %v2415_v37 }
   0xd   :  { %1955 = vmatprep.subr.bf16.mxu0 %v2277_v0 }
   0xe   :  { %1920 = vmatmul.mubr.msk.bf16.gmra.mrb[4].mxu0 %vm89_vm1, %v2137_v33 }
   0xf   :  { %1943 = vmatprep.mubr.msk.bf16.mxu0 %vm2278_vm0, %v2277_v0  ;;  %1934 = vmatpush3.bf16.msra.mxu1 %v2407_v36 }
  0x10   :  { %1947 = vmatprep.subr.bf16.mxu1 %v2277_v0 }
  0x12   :  { %1936 = vmatmul.mubr.bf16.vlgmr.msra.gmra.mrb[4].mxu1 %v2279_v6 }
  0x13   :  { %1948 = vmatpush3.bf16.msra.mxu1 %v2341_v2  ;;  %1951 = vmatprep.mubr.msk.bf16.mxu1 %vm2278_vm0, %v2277_v0 }
  0x14   :  { %1949 = vmatprep.subr.bf16.mxu1 %v2277_v0 }
  0x17   :  { %1950 = vmatpush3.bf16.msra.mxu1 %v2355_v5 }
  0x18   :  { %1963 = vmatprep.subr.bf16.mxu1 %v2277_v0 }
  0xd9   :  { %v2368_v8 = vpop.f32.mrb[0].mxu0 }
  0xda   :  { %v136_v9 = vpop.f32.mrb[1].mxu0 }
  0xdb   :  { %v137_v10 = vadd.f32 %v2366_v7, %v136_v9  ;;  %v2371_v11 = vpop.f32.mrb[2].mxu0 }
  0xdc   :  { %v2373_v12 = vpop.f32.mrb[3].mxu0 }
  0xdd   :  { %v222_v13 = vpop.f32.mrb[0].mxu1  ;;  %v140_v51 = vadd.f32 %v2366_v7, %v2373_v12 }
  0xde   :  { %v228_v14 = vadd.f32 %v222_v13, %v137_v10  ;;  %v1929_v15 = vpop.f32.mrb[1].mxu1 }
  0xdf   :  { %v225_v16 = vpop.f32.mrb[2].mxu1 }
  0xe0   :  { %v1786_v17 = vmul.f32 -1.442695, %v228_v14  ;;  %v1930_v18 = vpop.f32.mrb[3].mxu1 }
  0xe1   :  { %v2432_v42 = vpop.f32.mrb[4].mxu0 }
  0xe2   :  { %2141 = vpow2.f32 %v1786_v17  ;;  %v2434_v43 = vpop.f32.mrb[5].mxu0 }
  0xe3   :  { %2143 = vtanh.f32 %v228_v14  ;;  %v2436_v44 = vpop.f32.mrb[6].mxu0 }
  0xe4   :  { %v2438_v45 = vpop.f32.mrb[7].mxu0 }
  0xe5   :  { %v301_v46 = vpop.f32.mrb[4].mxu1 }
  0xe6   :  { %v1937_v47 = vpop.f32.mrb[5].mxu1 }
  0xe7   :  { %v304_v48 = vpop.f32.mrb[6].mxu1 }
  0xe8   :  { %v1938_v49 = vpop.f32.mrb[7].mxu1 }
  0xec   :  { %v2142_v19 = vpop.eup %2141 }
  0xed   :  { %v233_v21 = vadd.f32 1.0, %v2142_v19  ;;  %v2144_v24 = vpop.eup %2143 }
  0xef   :  { %2145 = vrcp.f32 %v233_v21 }
  0xf9   :  { %v2146_v25 = vpop.eup %2145 }
  0xfa   :  { %v236_v26 = vsel %vm2375_vm4, %v2144_v24, %v2146_v25 }
  0xfb   :  { %239 = vrot.lane.b32.xlu0 %v236_v26, %s2280_s20  ;;  %v237_v29 = vmul.f32 0.0, %v236_v26 }
 0x16d   :  { %v240_v27 = vpop.permute.xlu0 %239 }
 0x16e   :  { %v242_v28 = vmul.f32 %v240_v27, %v236_v26 }
 0x170   :  { %244 = vrot.lane.b32.xlu0 %v242_v28, %s2281_s21 }
 0x1e2   :  { %v245_v30 = vpop.permute.xlu0 %244 }
 0x1e3   :  { %v2383_v31 = vadd.f32 %v245_v30, %v237_v29 }
 0x1e5   :  { %2147 = vtanh.f32 %v2383_v31 }
 0x1ef   :  { %v2148_v38 = vpop.eup %2147 }
 0x1f0   :  { %250 = vrot.lane.b32.xlu1 %v2148_v38, %s2280_s20 }
 0x262   :  { %v251_v39 = vpop.permute.xlu1 %250 }
 0x263   :  { %v253_v40 = vmul.f32 %v251_v39, %v236_v26 }
 0x265   :  { %v254_v41 = vpack.c.bf16 %v253_v40, %v253_v40 }
 0x267   :  { %308 = vrot.lane.b32.xlu1 %v254_v41, %s2281_s21 }
 0x2d9   :  { %v309_v50 = vpop.permute.xlu1 %308 }
 0x2da   :  { %1944 = vmatmul.mubr.msk.bf16.vlgmr.msra.gmra.mrb[8].mxu0 %vm184_vm5, %v309_v50  ;;  %1952 = vmatmul.mubr.msk.bf16.vlgmr.msra.gmra.mrb[8].mxu1 %vm184_vm5, %v309_v50 }
 0x2db   :  { %1964 = vmatpush3.bf16.msra.mxu1 %v2400_v35  ;;  %1956 = vmatpush3.bf16.msra.mxu0 %v2395_v34 }
 0x2dc   :  { %1965 = vmatprep.subr.bf16.mxu1 %v2277_v0  ;;  %1957 = vmatprep.subr.bf16.mxu0 %v2277_v0 }
 0x2dd   :  { %1967 = vmatprep.mubr.msk.bf16.mxu1 %vm2278_vm0, %v2277_v0  ;;  %1959 = vmatprep.mubr.msk.bf16.mxu0 %vm2278_vm0, %v2277_v0 }
 0x2df   :  { %1966 = vmatpush3.bf16.msra.mxu1 %v2415_v37  ;;  %1958 = vmatpush3.bf16.msra.mxu0 %v2407_v36 }
 0x2e0   :  { %1971 = vmatprep.subr.bf16.mxu0 %v2277_v0  ;;  %1979 = vmatprep.subr.bf16.mxu1 %v2277_v0 }
 0x3ad   :  { %v359_v53 = vpop.f32.mrb[8].mxu0  ;;  %v431_v54 = vpop.f32.mrb[8].mxu1 }
 0x3ae   :  { %v360_v55 = vadd.f32 %v359_v53, %v301_v46  ;;  %v437_v56 = vadd.f32 %v431_v54, %v140_v51  ;;  %v1945_v57 = vpop.f32.mrb[9].mxu0  ;;  %v1953_v58 = vpop.f32.mrb[9].mxu1 }
 0x3af   :  { %v362_v59 = vpop.f32.mrb[10].mxu0  ;;  %v434_v60 = vpop.f32.mrb[10].mxu1 }
 0x3b0   :  { %v371_v61 = vadd.f32 %v2459_v52, %v360_v55  ;;  %v1795_v62 = vmul.f32 -1.442695, %v437_v56  ;;  %v1946_v63 = vpop.f32.mrb[11].mxu0  ;;  %v1954_v1 = vpop.f32.mrb[11].mxu1  ;;  %v145_v59 = vadd.f32 %v2368_v8, %v2366_v7 }
 0x3b2   :  { %v1793_v3 = vmul.f32 -1.442695, %v371_v61  ;;  %2149 = vpow2.f32 %v1795_v62 }
 0x3b4   :  { %2151 = vpow2.f32 %v1793_v3 }
 0x3b5   :  { %2153 = vtanh.f32 %v437_v56 }
 0x3b6   :  { %2155 = vtanh.f32 %v371_v61 }
 0x3bc   :  { %v2150_v4 = vpop.eup %2149 }
 0x3bd   :  { %v442_v9 = vadd.f32 1.0, %v2150_v4 }
 0x3be   :  { %v2152_v6 = vpop.eup %2151 }
 0x3bf   :  { %v376_v10 = vadd.f32 1.0, %v2152_v6  ;;  %2157 = vrcp.f32 %v442_v9  ;;  %v2154_v12 = vpop.eup %2153 }
 0x3c0   :  { %v2156_v13 = vpop.eup %2155 }
 0x3c1   :  { %2159 = vrcp.f32 %v376_v10 }
 0x3c9   :  { %v2158_v14 = vpop.eup %2157 }
 0x3ca   :  { %v445_v16 = vsel %vm2375_vm4, %v2154_v12, %v2158_v14 }
 0x3cb   :  { %v2160_v15 = vpop.eup %2159  ;;  %448 = vrot.lane.b32.xlu1 %v445_v16, %s2280_s20  ;;  %v446_v22 = vmul.f32 %v445_v16, %v2383_v31 }
 0x3cc   :  { %v379_v17 = vsel %vm2375_vm4, %v2156_v13, %v2160_v15 }
 0x3cd   :  { %382 = vrot.lane.b32.xlu0 %v379_v17, %s2280_s20  ;;  %v380_v25 = vmul.f32 0.0, %v379_v17 }
 0x43d   :  { %v449_v18 = vpop.permute.xlu1 %448 }
 0x43e   :  { %v451_v19 = vmul.f32 %v449_v18, %v445_v16 }
 0x43f   :  { %v383_v20 = vpop.permute.xlu0 %382 }
 0x440   :  { %v385_v21 = vmul.f32 %v383_v20, %v379_v17  ;;  %453 = vrot.lane.b32.xlu1 %v451_v19, %s2281_s21 }
 0x442   :  { %387 = vrot.lane.b32.xlu0 %v385_v21, %s2281_s21 }
 0x4b2   :  { %v454_v24 = vpop.permute.xlu1 %453 }
 0x4b3   :  { %v2471_v26 = vadd.f32 %v454_v24, %v446_v22 }
 0x4b4   :  { %v388_v27 = vpop.permute.xlu0 %387 }
 0x4b5   :  { %v2473_v28 = vadd.f32 %v388_v27, %v380_v25  ;;  %2161 = vtanh.f32 %v2471_v26 }
 0x4b7   :  { %2163 = vtanh.f32 %v2473_v28 }
 0x4bf   :  { %v2162_v29 = vpop.eup %2161 }
 0x4c0   :  { %459 = vrot.lane.b32.xlu1 %v2162_v29, %s2280_s20 }
 0x4c1   :  { %v2164_v30 = vpop.eup %2163 }
 0x4c2   :  { %393 = vrot.lane.b32.xlu0 %v2164_v30, %s2280_s20 }
 0x532   :  { %v460_v32 = vpop.permute.xlu1 %459 }
 0x533   :  { %v462_v33 = vmul.f32 %v460_v32, %v445_v16 }
 0x534   :  { %v394_v31 = vpop.permute.xlu0 %393 }
 0x535   :  { %v396_v38 = vmul.f32 %v394_v31, %v379_v17  ;;  %v463_v39 = vpack.c.bf16 %v462_v33, %v462_v33 }
 0x537   :  { %v464_v40 = vpack.c.bf16 %v396_v38, %v396_v38  ;;  %512 = vrot.lane.b32.xlu1 %v463_v39, %s2281_s21 }
 0x539   :  { %466 = vrot.lane.b32.xlu0 %v464_v40, %s2281_s21 }
 0x5a9   :  { %v513_v41 = vpop.permute.xlu1 %512 }
 0x5aa   :  { %1968 = vmatmul.mubr.msk.bf16.vlgmr.msra.gmra.mrb[12].mxu1 %vm184_vm5, %v513_v41 }
 0x5ab   :  { %v467_v46 = vpop.permute.xlu0 %466  ;;  %1980 = vmatpush3.bf16.msra.mxu1 %v2395_v34  ;;  %1983 = vmatprep.mubr.msk.bf16.mxu1 %vm2278_vm0, %v2277_v0 }
 0x5ac   :  { %1960 = vmatmul.mubr.msk.bf16.vlgmr.msra.gmra.mrb[12].mxu0 %vm184_vm5, %v467_v46  ;;  %1981 = vmatprep.subr.bf16.mxu1 %v2277_v0 }
 0x5ad   :  { %1972 = vmatpush3.bf16.msra.mxu0 %v2341_v2  ;;  %1975 = vmatprep.mubr.msk.bf16.mxu0 %vm2278_vm0, %v2277_v0 }
 0x5ae   :  { %1973 = vmatprep.subr.bf16.mxu0 %v2277_v0 }
 0x5af   :  { %1982 = vmatpush3.bf16.msra.mxu1 %v2407_v36 }
 0x5b0   :  { %1995 = vmatprep.subr.bf16.mxu1 %v2277_v0 }
 0x5b1   :  { %1974 = vmatpush3.bf16.msra.mxu0 %v2355_v5 }
 0x5b2   :  { %1987 = vmatprep.subr.bf16.mxu0 %v2277_v0 }
 0x5b4   :  { %1976 = vmatmul.mubr.msk.bf16.vlgmr.msra.gmra.mrb[16].mxu0 %vm184_vm5, %v513_v41 }
 0x5b5   :  { %1988 = vmatpush3.bf16.msra.mxu0 %v2400_v35  ;;  %1991 = vmatprep.mubr.msk.bf16.mxu0 %vm2278_vm0, %v2277_v0 }
 0x5b6   :  { %1989 = vmatprep.subr.bf16.mxu0 %v2277_v0 }
 0x5b9   :  { %1990 = vmatpush3.bf16.msra.mxu0 %v2415_v37 }
 0x5ba   :  { %2003 = vmatprep.subr.bf16.mxu0 %v2277_v0 }
 0x67d   :  { %v551_v47 = vpop.f32.mrb[12].mxu1 }
 0x67e   :  { %v1969_v48 = vpop.f32.mrb[13].mxu1 }
 0x67f   :  { %v505_v49 = vpop.f32.mrb[12].mxu0  ;;  %v554_v51 = vpop.f32.mrb[14].mxu1 }
 0x680   :  { %v552_v50 = vadd.f32 %v551_v47, %v505_v49  ;;  %v1961_v53 = vpop.f32.mrb[13].mxu0  ;;  %v1970_v54 = vpop.f32.mrb[15].mxu1  ;;  %v148_v51 = vadd.f32 %v2371_v11, %v2366_v7 }
 0x681   :  { %v508_v55 = vpop.f32.mrb[14].mxu0 }
 0x682   :  { %v557_v56 = vadd.f32 %v2459_v52, %v552_v50  ;;  %v1962_v57 = vpop.f32.mrb[15].mxu0 }
 0x684   :  { %v1798_v58 = vmul.f32 -1.442695, %v557_v56 }
 0x686   :  { %2165 = vpow2.f32 %v1798_v58 }
 0x687   :  { %v617_v60 = vpop.f32.mrb[16].mxu0 }
 0x688   :  { %v623_v61 = vadd.f32 %v617_v60, %v145_v59  ;;  %v1977_v62 = vpop.f32.mrb[17].mxu0 }
 0x689   :  { %v620_v63 = vpop.f32.mrb[18].mxu0 }
 0x68a   :  { %v1800_v1 = vmul.f32 -1.442695, %v623_v61  ;;  %v1978_v3 = vpop.f32.mrb[19].mxu0 }
 0x68c   :  { %2167 = vpow2.f32 %v1800_v1 }
 0x68d   :  { %2169 = vtanh.f32 %v557_v56 }
 0x690   :  { %v2166_v4 = vpop.eup %2165 }
 0x691   :  { %v562_v6 = vadd.f32 1.0, %v2166_v4 }
 0x693   :  { %2171 = vrcp.f32 %v562_v6 }
 0x694   :  { %2173 = vtanh.f32 %v623_v61 }
 0x696   :  { %v2168_v9 = vpop.eup %2167 }
 0x697   :  { %v628_v10 = vadd.f32 1.0, %v2168_v9  ;;  %v2170_v12 = vpop.eup %2169 }
 0x699   :  { %2175 = vrcp.f32 %v628_v10 }
 0x69d   :  { %v2172_v13 = vpop.eup %2171 }
 0x69e   :  { %v565_v8 = vsel %vm2375_vm4, %v2170_v12, %v2172_v13  ;;  %v2174_v14 = vpop.eup %2173 }
 0x69f   :  { %568 = vrot.lane.b32.xlu0 %v565_v8, %s2280_s20  ;;  %v566_v21 = vmul.f32 %v565_v8, %v2473_v28 }
 0x6a3   :  { %v2176_v15 = vpop.eup %2175 }
 0x6a4   :  { %v631_v16 = vsel %vm2375_vm4, %v2174_v14, %v2176_v15 }
 0x6a5   :  { %634 = vrot.lane.b32.xlu1 %v631_v16, %s2280_s20  ;;  %v632_v25 = vmul.f32 %v631_v16, %v2471_v26 }
 0x711   :  { %v569_v17 = vpop.permute.xlu0 %568 }
 0x712   :  { %v571_v18 = vmul.f32 %v569_v17, %v565_v8 }
 0x714   :  { %573 = vrot.lane.b32.xlu0 %v571_v18, %s2281_s21 }
 0x717   :  { %v635_v19 = vpop.permute.xlu1 %634 }
 0x718   :  { %v637_v20 = vmul.f32 %v635_v19, %v631_v16 }
 0x71a   :  { %639 = vrot.lane.b32.xlu1 %v637_v20, %s2281_s21 }
 0x786   :  { %v574_v22 = vpop.permute.xlu0 %573 }
 0x787   :  { %v2514_v24 = vadd.f32 %v574_v22, %v566_v21 }
 0x789   :  { %2177 = vtanh.f32 %v2514_v24 }
 0x78c   :  { %v640_v27 = vpop.permute.xlu1 %639 }
 0x78d   :  { %v2518_v29 = vadd.f32 %v640_v27, %v632_v25 }
 0x78f   :  { %2179 = vtanh.f32 %v2518_v29 }
 0x793   :  { %v2178_v30 = vpop.eup %2177 }
 0x794   :  { %579 = vrot.lane.b32.xlu0 %v2178_v30, %s2280_s20 }
 0x799   :  { %v2180_v32 = vpop.eup %2179 }
 0x79a   :  { %645 = vrot.lane.b32.xlu1 %v2180_v32, %s2280_s20 }
 0x806   :  { %v580_v33 = vpop.permute.xlu0 %579 }
 0x807   :  { %v582_v28 = vmul.f32 %v580_v33, %v565_v8 }
 0x809   :  { %v650_v31 = vpack.c.bf16 %v582_v28, %v582_v28 }
 0x80b   :  { %652 = vrot.lane.b32.xlu0 %v650_v31, %s2281_s21 }
 0x80c   :  { %v646_v38 = vpop.permute.xlu1 %645 }
 0x80d   :  { %v648_v39 = vmul.f32 %v646_v38, %v631_v16 }
 0x80f   :  { %v649_v40 = vpack.c.bf16 %v648_v39, %v648_v39 }
 0x811   :  { %698 = vrot.lane.b32.xlu1 %v649_v40, %s2281_s21 }
 0x87d   :  { %v653_v26 = vpop.permute.xlu0 %652 }
 0x87e   :  { %1984 = vmatmul.mubr.msk.bf16.vlgmr.msra.gmra.mrb[16].mxu1 %vm184_vm5, %v653_v26 }
 0x87f   :  { %1996 = vmatpush3.bf16.msra.mxu1 %v2341_v2  ;;  %1999 = vmatprep.mubr.msk.bf16.mxu1 %vm2278_vm0, %v2277_v0 }
 0x880   :  { %1997 = vmatprep.subr.bf16.mxu1 %v2277_v0 }
 0x883   :  { %1998 = vmatpush3.bf16.msra.mxu1 %v2355_v5  ;;  %v699_v41 = vpop.permute.xlu1 %698 }
 0x884   :  { %1992 = vmatmul.mubr.msk.bf16.vlgmr.msra.gmra.mrb[20].mxu0 %vm184_vm5, %v699_v41  ;;  %2011 = vmatprep.subr.bf16.mxu1 %v2277_v0 }
 0x885   :  { %2004 = vmatpush3.bf16.msra.mxu0 %v2395_v34  ;;  %2007 = vmatprep.mubr.msk.bf16.mxu0 %vm2278_vm0, %v2277_v0 }
 0x886   :  { %2000 = vmatmul.mubr.msk.bf16.vlgmr.msra.gmra.mrb[20].mxu1 %vm184_vm5, %v699_v41  ;;  %2005 = vmatprep.subr.bf16.mxu0 %v2277_v0 }
 0x887   :  { %2012 = vmatpush3.bf16.msra.mxu1 %v2400_v35  ;;  %2015 = vmatprep.mubr.msk.bf16.mxu1 %vm2278_vm0, %v2277_v0 }
 0x888   :  { %2013 = vmatprep.subr.bf16.mxu1 %v2277_v0 }
 0x889   :  { %2006 = vmatpush3.bf16.msra.mxu0 %v2407_v36 }
 0x88a   :  { %2019 = vmatprep.subr.bf16.mxu0 %v2277_v0 }
 0x88b   :  { %2014 = vmatpush3.bf16.msra.mxu1 %v2415_v37 }
 0x88c   :  { %2027 = vmatprep.subr.bf16.mxu1 %v2277_v0 }
 0x951   :  { %v691_v46 = vpop.f32.mrb[16].mxu1 }
 0x952   :  { %v1985_v47 = vpop.f32.mrb[17].mxu1 }
 0x953   :  { %v694_v48 = vpop.f32.mrb[18].mxu1 }
 0x954   :  { %v1986_v49 = vpop.f32.mrb[19].mxu1 }
 0x957   :  { %v737_v50 = vpop.f32.mrb[20].mxu0 }
 0x958   :  { %v738_v53 = vadd.f32 %v737_v50, %v691_v46  ;;  %v1993_v54 = vpop.f32.mrb[21].mxu0 }
 0x959   :  { %v740_v55 = vpop.f32.mrb[22].mxu0  ;;  %v803_v56 = vpop.f32.mrb[20].mxu1 }
 0x95a   :  { %v743_v57 = vadd.f32 %v2459_v52, %v738_v53  ;;  %v809_v58 = vadd.f32 %v803_v56, %v148_v51  ;;  %v1994_v59 = vpop.f32.mrb[23].mxu0  ;;  %v2001_v60 = vpop.f32.mrb[21].mxu1  ;;  %v153_v56 = vadd.f32 %v2366_v7, %v2434_v43 }
 0x95b   :  { %v806_v61 = vpop.f32.mrb[22].mxu1 }
 0x95c   :  { %v1803_v62 = vmul.f32 -1.442695, %v743_v57  ;;  %v1805_v63 = vmul.f32 -1.442695, %v809_v58  ;;  %v2002_v1 = vpop.f32.mrb[23].mxu1 }
 0x95e   :  { %2181 = vpow2.f32 %v1803_v62 }
 0x95f   :  { %2183 = vpow2.f32 %v1805_v63 }
 0x960   :  { %2185 = vtanh.f32 %v743_v57 }
 0x961   :  { %2187 = vtanh.f32 %v809_v58 }
 0x968   :  { %v2182_v3 = vpop.eup %2181 }
 0x969   :  { %v2184_v4 = vpop.eup %2183  ;;  %v748_v6 = vadd.f32 1.0, %v2182_v3 }
 0x96a   :  { %v814_v11 = vadd.f32 1.0, %v2184_v4  ;;  %v2186_v9 = vpop.eup %2185 }
 0x96b   :  { %2189 = vrcp.f32 %v748_v6  ;;  %v2188_v10 = vpop.eup %2187 }
 0x96c   :  { %2191 = vrcp.f32 %v814_v11 }
 0x975   :  { %v2190_v12 = vpop.eup %2189 }
 0x976   :  { %v2192_v13 = vpop.eup %2191  ;;  %v751_v8 = vsel %vm2375_vm4, %v2186_v9, %v2190_v12 }
 0x977   :  { %v817_v14 = vsel %vm2375_vm4, %v2188_v10, %v2192_v13  ;;  %754 = vrot.lane.b32.xlu0 %v751_v8, %s2280_s20  ;;  %v752_v19 = vmul.f32 %v751_v8, %v2514_v24 }
 0x978   :  { %820 = vrot.lane.b32.xlu1 %v817_v14, %s2280_s20  ;;  %v818_v20 = vmul.f32 %v817_v14, %v2518_v29 }
 0x9e9   :  { %v755_v15 = vpop.permute.xlu0 %754 }
 0x9ea   :  { %v821_v16 = vpop.permute.xlu1 %820  ;;  %v757_v17 = vmul.f32 %v755_v15, %v751_v8 }
 0x9eb   :  { %v823_v18 = vmul.f32 %v821_v16, %v817_v14 }
 0x9ec   :  { %759 = vrot.lane.b32.xlu0 %v757_v17, %s2281_s21 }
 0x9ed   :  { %825 = vrot.lane.b32.xlu1 %v823_v18, %s2281_s21 }
 0xa5e   :  { %v760_v21 = vpop.permute.xlu0 %759 }
 0xa5f   :  { %v826_v22 = vpop.permute.xlu1 %825  ;;  %v2559_v25 = vadd.f32 %v760_v21, %v752_v19 }
 0xa60   :  { %v2561_v27 = vadd.f32 %v826_v22, %v818_v20 }
 0xa61   :  { %2193 = vtanh.f32 %v2559_v25 }
 0xa62   :  { %2195 = vtanh.f32 %v2561_v27 }
 0xa6b   :  { %v2194_v30 = vpop.eup %2193 }
 0xa6c   :  { %v2196_v32 = vpop.eup %2195  ;;  %765 = vrot.lane.b32.xlu0 %v2194_v30, %s2280_s20 }
 0xa6d   :  { %831 = vrot.lane.b32.xlu1 %v2196_v32, %s2280_s20 }
 0xade   :  { %v766_v33 = vpop.permute.xlu0 %765 }
 0xadf   :  { %v832_v24 = vpop.permute.xlu1 %831  ;;  %v768_v28 = vmul.f32 %v766_v33, %v751_v8 }
 0xae0   :  { %v834_v29 = vmul.f32 %v832_v24, %v817_v14 }
 0xae1   :  { %v836_v31 = vpack.c.bf16 %v768_v28, %v768_v28 }
 0xae2   :  { %v835_v38 = vpack.c.bf16 %v834_v29, %v834_v29 }
 0xae3   :  { %838 = vrot.lane.b32.xlu0 %v836_v31, %s2281_s21 }
 0xae4   :  { %884 = vrot.lane.b32.xlu1 %v835_v38, %s2281_s21 }
 0xb55   :  { %v839_v39 = vpop.permute.xlu0 %838 }
 0xb56   :  { %v885_v40 = vpop.permute.xlu1 %884  ;;  %2008 = vmatmul.mubr.msk.bf16.vlgmr.msra.gmra.mrb[24].mxu0 %vm184_vm5, %v839_v39 }
 0xb57   :  { %2016 = vmatmul.mubr.msk.bf16.vlgmr.msra.gmra.mrb[24].mxu1 %vm184_vm5, %v885_v40  ;;  %2020 = vmatpush3.bf16.msra.mxu0 %v2341_v2 }
 0xb58   :  { %2021 = vmatprep.subr.bf16.mxu0 %v2277_v0  ;;  %2023 = vmatprep.mubr.msk.bf16.mxu0 %vm2278_vm0, %v2277_v0 }
 0xb59   :  { %2028 = vmatpush3.bf16.msra.mxu1 %v2395_v34  ;;  %2031 = vmatprep.mubr.msk.bf16.mxu1 %vm2278_vm0, %v2277_v0 }
 0xb5a   :  { %2029 = vmatprep.subr.bf16.mxu1 %v2277_v0 }
 0xb5b   :  { %2022 = vmatpush3.bf16.msra.mxu0 %v2355_v5 }
 0xb5c   :  { %2035 = vmatprep.subr.bf16.mxu0 %v2277_v0 }
 0xb5d   :  { %2030 = vmatpush3.bf16.msra.mxu1 %v2407_v36 }
 0xb5e   :  { %2024 = vmatmul.mubr.msk.bf16.vlgmr.msra.gmra.mrb[28].mxu0 %vm184_vm5, %v885_v40  ;;  %2043 = vmatprep.subr.bf16.mxu1 %v2277_v0 }
 0xb5f   :  { %2036 = vmatpush3.bf16.msra.mxu0 %v2400_v35  ;;  %2039 = vmatprep.mubr.msk.bf16.mxu0 %vm2278_vm0, %v2277_v0 }
 0xb60   :  { %2037 = vmatprep.subr.bf16.mxu0 %v2277_v0 }
 0xb63   :  { %2038 = vmatpush3.bf16.msra.mxu0 %v2415_v37 }
 0xb64   :  { %2051 = vmatprep.subr.bf16.mxu0 %v2277_v0 }
 0xc29   :  { %v877_v26 = vpop.f32.mrb[24].mxu0 }
 0xc2a   :  { %v923_v41 = vpop.f32.mrb[24].mxu1  ;;  %v2009_v46 = vpop.f32.mrb[25].mxu0 }
 0xc2b   :  { %v924_v47 = vadd.f32 %v923_v41, %v877_v26  ;;  %v2017_v48 = vpop.f32.mrb[25].mxu1  ;;  %v880_v49 = vpop.f32.mrb[26].mxu0 }
 0xc2c   :  { %v926_v50 = vpop.f32.mrb[26].mxu1  ;;  %v2010_v51 = vpop.f32.mrb[27].mxu0 }
 0xc2d   :  { %v929_v53 = vadd.f32 %v2459_v52, %v924_v47  ;;  %v2018_v54 = vpop.f32.mrb[27].mxu1  ;;  %v156_v47 = vadd.f32 %v2366_v7, %v2438_v45 }
 0xc2f   :  { %v1808_v55 = vmul.f32 -1.442695, %v929_v53 }
 0xc31   :  { %2197 = vpow2.f32 %v1808_v55  ;;  %v989_v57 = vpop.f32.mrb[28].mxu0 }
 0xc32   :  { %v995_v58 = vadd.f32 %v989_v57, %v153_v56  ;;  %v2025_v59 = vpop.f32.mrb[29].mxu0 }
 0xc33   :  { %v992_v60 = vpop.f32.mrb[30].mxu0 }
 0xc34   :  { %v1810_v61 = vmul.f32 -1.442695, %v995_v58  ;;  %v2026_v62 = vpop.f32.mrb[31].mxu0 }
 0xc36   :  { %2199 = vpow2.f32 %v1810_v61 }
 0xc37   :  { %2201 = vtanh.f32 %v929_v53 }
 0xc3b   :  { %v2198_v63 = vpop.eup %2197 }
 0xc3c   :  { %v934_v1 = vadd.f32 1.0, %v2198_v63 }
 0xc3e   :  { %2203 = vrcp.f32 %v934_v1 }
 0xc3f   :  { %2205 = vtanh.f32 %v995_v58 }
 0xc40   :  { %v2200_v3 = vpop.eup %2199 }
 0xc41   :  { %v1000_v4 = vadd.f32 1.0, %v2200_v3  ;;  %v2202_v6 = vpop.eup %2201 }
 0xc43   :  { %2207 = vrcp.f32 %v1000_v4 }
 0xc48   :  { %v2204_v11 = vpop.eup %2203 }
 0xc49   :  { %v937_v43 = vsel %vm2375_vm4, %v2202_v6, %v2204_v11  ;;  %v2206_v9 = vpop.eup %2205 }
 0xc4a   :  { %940 = vrot.lane.b32.xlu0 %v937_v43, %s2280_s20  ;;  %v938_v16 = vmul.f32 %v937_v43, %v2559_v25 }
 0xc4d   :  { %v2208_v10 = vpop.eup %2207 }
 0xc4e   :  { %v1003_v12 = vsel %vm2375_vm4, %v2206_v9, %v2208_v10 }
 0xc4f   :  { %1006 = vrot.lane.b32.xlu1 %v1003_v12, %s2280_s20  ;;  %v1004_v19 = vmul.f32 %v1003_v12, %v2561_v27 }
 0xcbc   :  { %v941_v13 = vpop.permute.xlu0 %940 }
 0xcbd   :  { %v943_v8 = vmul.f32 %v941_v13, %v937_v43 }
 0xcbf   :  { %945 = vrot.lane.b32.xlu0 %v943_v8, %s2281_s21 }
 0xcc1   :  { %v1007_v14 = vpop.permute.xlu1 %1006 }
 0xcc2   :  { %v1009_v15 = vmul.f32 %v1007_v14, %v1003_v12 }
 0xcc4   :  { %1011 = vrot.lane.b32.xlu1 %v1009_v15, %s2281_s21 }
 0xd31   :  { %v946_v17 = vpop.permute.xlu0 %945 }
 0xd32   :  { %v2602_v18 = vadd.f32 %v946_v17, %v938_v16 }
 0xd34   :  { %2209 = vtanh.f32 %v2602_v18 }
 0xd36   :  { %v1012_v20 = vpop.permute.xlu1 %1011 }
 0xd37   :  { %v2606_v21 = vadd.f32 %v1012_v20, %v1004_v19 }
 0xd39   :  { %2211 = vtanh.f32 %v2606_v21 }
 0xd3e   :  { %v2210_v22 = vpop.eup %2209 }
 0xd3f   :  { %951 = vrot.lane.b32.xlu0 %v2210_v22, %s2280_s20 }
 0xd43   :  { %v2212_v30 = vpop.eup %2211 }
 0xd44   :  { %1017 = vrot.lane.b32.xlu1 %v2212_v30, %s2280_s20 }
 0xdb1   :  { %v952_v32 = vpop.permute.xlu0 %951 }
 0xdb2   :  { %v954_v25 = vmul.f32 %v952_v32, %v937_v43 }
 0xdb4   :  { %v1022_v33 = vpack.c.bf16 %v954_v25, %v954_v25 }
 0xdb6   :  { %1024 = vrot.lane.b32.xlu0 %v1022_v33, %s2281_s21  ;;  %v1018_v24 = vpop.permute.xlu1 %1017  ;;  %v2662_v33 = vld [vmem:[%s2786_s2] sm:$0xff]  }
 0xdb7   :  { %v1020_v28 = vmul.f32 %v1018_v24, %v1003_v12 }
 0xdb9   :  { %v1021_v29 = vpack.c.bf16 %v1020_v28, %v1020_v28 }
 0xdbb   :  { %1070 = vrot.lane.b32.xlu1 %v1021_v29, %s2281_s21 }
 0xe28   :  { %v1025_v27 = vpop.permute.xlu0 %1024 }
 0xe29   :  { %2032 = vmatmul.mubr.msk.bf16.vlgmr.msra.gmra.mrb[28].mxu1 %vm184_vm5, %v1025_v27 }
 0xe2a   :  { %2044 = vmatpush3.bf16.msra.mxu1 %v2341_v2  ;;  %2047 = vmatprep.mubr.msk.bf16.mxu1 %vm2278_vm0, %v2277_v0 }
 0xe2b   :  { %2045 = vmatprep.subr.bf16.mxu1 %v2277_v0 }
 0xe2d   :  { %v1071_v31 = vpop.permute.xlu1 %1070 }
 0xe2e   :  { %2046 = vmatpush3.bf16.msra.mxu1 %v2355_v5  ;;  %2040 = vmatmul.mubr.msk.bf16.vlgmr.msra.gmra.mrb[32].mxu0 %vm184_vm5, %v1071_v31 }
 0xe2f   :  { %2059 = vmatprep.subr.bf16.mxu1 %v2277_v0  ;;  %2052 = vmatpush3.bf16.msra.mxu0 %v2395_v34 }
 0xe30   :  { %2053 = vmatprep.subr.bf16.mxu0 %v2277_v0  ;;  %2055 = vmatprep.mubr.msk.bf16.mxu0 %vm2278_vm0, %v2277_v0 }
 0xe31   :  { %2048 = vmatmul.mubr.msk.bf16.vlgmr.msra.gmra.mrb[32].mxu1 %vm184_vm5, %v1071_v31 }
 0xe32   :  { %2060 = vmatpush3.bf16.msra.mxu1 %v2400_v35  ;;  %2063 = vmatprep.mubr.msk.bf16.mxu1 %vm2278_vm0, %v2277_v0 }
 0xe33   :  { %2061 = vmatprep.subr.bf16.mxu1 %v2277_v0  ;;  %2054 = vmatpush3.bf16.msra.mxu0 %v2407_v36 }
 0xe34   :  { %2067 = vmatprep.subr.bf16.mxu0 %v2277_v0 }
 0xe36   :  { %2062 = vmatpush3.bf16.msra.mxu1 %v2415_v37 }
 0xe37   :  { %2075 = vmatprep.subr.bf16.mxu1 %v2277_v0 }
 0xefc   :  { %v1063_v2 = vpop.f32.mrb[28].mxu1 }
 0xefd   :  { %v2033_v38 = vpop.f32.mrb[29].mxu1 }
 0xefe   :  { %v1066_v39 = vpop.f32.mrb[30].mxu1 }
 0xeff   :  { %v2034_v40 = vpop.f32.mrb[31].mxu1  ;;  %v2687_v39 = vld [vmem:[%s2788_s3] ss:$0 sm:$0xff] }
 0xf01   :  { %v1109_v26 = vpop.f32.mrb[32].mxu0 }
 0xf02   :  { %v1110_v41 = vadd.f32 %v1109_v26, %v1063_v2  ;;  %v2041_v46 = vpop.f32.mrb[33].mxu0 }
 0xf03   :  { %v1112_v48 = vpop.f32.mrb[34].mxu0 }
 0xf04   :  { %v1115_v49 = vadd.f32 %v2459_v52, %v1110_v41  ;;  %v1175_v50 = vpop.f32.mrb[32].mxu1  ;;  %v2042_v51 = vpop.f32.mrb[35].mxu0 }
 0xf05   :  { %v1181_v53 = vadd.f32 %v1175_v50, %v156_v47  ;;  %v2049_v54 = vpop.f32.mrb[33].mxu1 }
 0xf06   :  { %v1813_v55 = vmul.f32 -1.442695, %v1115_v49  ;;  %v1178_v56 = vpop.f32.mrb[34].mxu1 }
 0xf07   :  { %v1815_v57 = vmul.f32 -1.442695, %v1181_v53  ;;  %v2050_v58 = vpop.f32.mrb[35].mxu1 }
 0xf08   :  { %2213 = vpow2.f32 %v1813_v55 }
 0xf09   :  { %2215 = vpow2.f32 %v1815_v57 }
 0xf0a   :  { %2217 = vtanh.f32 %v1115_v49 }
 0xf0b   :  { %2219 = vtanh.f32 %v1181_v53 }
 0xf12   :  { %v2214_v59 = vpop.eup %2213 }
 0xf13   :  { %v2216_v60 = vpop.eup %2215  ;;  %v1120_v61 = vadd.f32 1.0, %v2214_v59 }
 0xf14   :  { %v1186_v62 = vadd.f32 1.0, %v2216_v60  ;;  %v2218_v7 = vpop.eup %2217 }
 0xf15   :  { %2221 = vrcp.f32 %v1120_v61  ;;  %v2220_v45 = vpop.eup %2219 }
 0xf16   :  { %2223 = vrcp.f32 %v1186_v62 }
 0xf1f   :  { %v2222_v63 = vpop.eup %2221 }
 0xf20   :  { %v2224_v1 = vpop.eup %2223  ;;  %v1123_v3 = vsel %vm2375_vm4, %v2218_v7, %v2222_v63 }
 0xf21   :  { %v1189_v4 = vsel %vm2375_vm4, %v2220_v45, %v2224_v1  ;;  %1126 = vrot.lane.b32.xlu0 %v1123_v3, %s2280_s20  ;;  %v1124_v10 = vmul.f32 %v1123_v3, %v2602_v18 }
 0xf22   :  { %1192 = vrot.lane.b32.xlu1 %v1189_v4, %s2280_s20  ;;  %v1190_v12 = vmul.f32 %v1189_v4, %v2606_v21 }
 0xf93   :  { %v1127_v6 = vpop.permute.xlu0 %1126 }
 0xf94   :  { %v1193_v11 = vpop.permute.xlu1 %1192  ;;  %v1129_v43 = vmul.f32 %v1127_v6, %v1123_v3 }
 0xf95   :  { %v1195_v9 = vmul.f32 %v1193_v11, %v1189_v4 }
 0xf96   :  { %1131 = vrot.lane.b32.xlu0 %v1129_v43, %s2281_s21 }
 0xf97   :  { %1197 = vrot.lane.b32.xlu1 %v1195_v9, %s2281_s21 }
0x1008   :  { %v1132_v13 = vpop.permute.xlu0 %1131 }
0x1009   :  { %v1198_v8 = vpop.permute.xlu1 %1197  ;;  %v2647_v14 = vadd.f32 %v1132_v13, %v1124_v10 }
0x100a   :  { %v2649_v15 = vadd.f32 %v1198_v8, %v1190_v12 }
0x100b   :  { %2225 = vtanh.f32 %v2647_v14 }
0x100c   :  { %2227 = vtanh.f32 %v2649_v15 }
0x1015   :  { %v2226_v16 = vpop.eup %2225 }
0x1016   :  { %v2228_v17 = vpop.eup %2227  ;;  %1137 = vrot.lane.b32.xlu0 %v2226_v16, %s2280_s20  ;;  %v2271_v16 = vld [vmem:[%s2786_s2 + $0x8] sm:$0xff]  }
0x1017   :  { %1203 = vrot.lane.b32.xlu1 %v2228_v17, %s2280_s20  ;;  %v2272_v17 = vld [vmem:[%s2789_s5] sm:$0xff]  }
0x1088   :  { %v1138_v19 = vpop.permute.xlu0 %1137 }
0x1089   :  { %v1204_v18 = vpop.permute.xlu1 %1203  ;;  %v1140_v20 = vmul.f32 %v1138_v19, %v1123_v3  ;;  %v2273_v19 = vld [vmem:[%s2790_s4] sm:$0xff]  }
0x108a   :  { %v1206_v21 = vmul.f32 %v1204_v18, %v1189_v4  ;;  %v2274_v18 = vld [vmem:[%s2789_s5 + $0x8] sm:$0xff]  }
0x108b   :  { %v1208_v22 = vpack.c.bf16 %v1140_v20, %v1140_v20  ;;  %v2275_v20 = vld [vmem:[%s2790_s4 + $0x8] sm:$0xff]  }
0x108c   :  { %v1207_v30 = vpack.c.bf16 %v1206_v21, %v1206_v21 }
0x108d   :  { %1210 = vrot.lane.b32.xlu0 %v1208_v22, %s2281_s21 }
0x108e   :  { %1256 = vrot.lane.b32.xlu1 %v1207_v30, %s2281_s21 }
0x10ff   :  { %v1211_v32 = vpop.permute.xlu0 %1210 }
0x1100   :  { %v1257_v25 = vpop.permute.xlu1 %1256  ;;  %2056 = vmatmul.mubr.msk.bf16.vlgmr.msra.gmra.mrb[36].mxu0 %vm184_vm5, %v1211_v32 }
0x1101   :  { %2064 = vmatmul.mubr.msk.bf16.vlgmr.msra.gmra.mrb[36].mxu1 %vm184_vm5, %v1257_v25  ;;  %2068 = vmatpush3.bf16.msra.mxu0 %v2662_v33 }
0x1102   :  { %2069 = vmatprep.subr.bf16.mxu0 %v2277_v0  ;;  %2071 = vmatprep.mubr.msk.bf16.mxu0 %vm2278_vm0, %v2277_v0 }
0x1103   :  { %2076 = vmatpush3.bf16.msra.mxu1 %v2395_v34  ;;  %2079 = vmatprep.mubr.msk.bf16.mxu1 %vm2278_vm0, %v2277_v0 }
0x1104   :  { %2077 = vmatprep.subr.bf16.mxu1 %v2277_v0 }
0x1105   :  { %2070 = vmatpush3.bf16.msra.mxu0 %v2355_v5 }
0x1106   :  { %2083 = vmatprep.subr.bf16.mxu0 %v2277_v0 }
0x1107   :  { %2078 = vmatpush3.bf16.msra.mxu1 %v2407_v36 }
0x1108   :  { %2072 = vmatmul.mubr.msk.bf16.vlgmr.msra.gmra.mrb[40].mxu0 %vm184_vm5, %v1257_v25  ;;  %2091 = vmatprep.subr.bf16.mxu1 %v2277_v0 }
0x1109   :  { %2084 = vmatpush3.bf16.msra.mxu0 %v2400_v35  ;;  %2087 = vmatprep.mubr.msk.bf16.mxu0 %vm2278_vm0, %v2277_v0 }
0x110a   :  { %2085 = vmatprep.subr.bf16.mxu0 %v2277_v0 }
0x110d   :  { %2086 = vmatpush3.bf16.msra.mxu0 %v2415_v37  ;;  %v161_v37 = vadd.f32 %v2687_v39, %v2432_v42 }
0x110e   :  { %2099 = vmatprep.subr.bf16.mxu0 %v2277_v0 }
0x11d3   :  { %v1249_v5 = vpop.f32.mrb[36].mxu0 }
0x11d4   :  { %v1295_v34 = vpop.f32.mrb[36].mxu1  ;;  %v2057_v24 = vpop.f32.mrb[37].mxu0 }
0x11d5   :  { %v1296_v28 = vadd.f32 %v1295_v34, %v1249_v5  ;;  %v2065_v36 = vpop.f32.mrb[37].mxu1  ;;  %v1252_v29 = vpop.f32.mrb[38].mxu0  ;;  %v164_v34 = vadd.f32 %v2687_v39, %v2436_v44 }
0x11d6   :  { %v1298_v27 = vpop.f32.mrb[38].mxu1  ;;  %v2058_v31 = vpop.f32.mrb[39].mxu0 }
0x11d7   :  { %v1301_v2 = vadd.f32 %v2459_v52, %v1296_v28  ;;  %v2066_v35 = vpop.f32.mrb[39].mxu1 }
0x11d9   :  { %v1818_v38 = vmul.f32 -1.442695, %v1301_v2 }
0x11db   :  { %2229 = vpow2.f32 %v1818_v38  ;;  %v1361_v40 = vpop.f32.mrb[40].mxu0 }
0x11dc   :  { %v1367_v26 = vadd.f32 %v1361_v40, %v161_v37  ;;  %v2073_v41 = vpop.f32.mrb[41].mxu0 }
0x11dd   :  { %v1364_v46 = vpop.f32.mrb[42].mxu0 }
0x11de   :  { %v1820_v47 = vmul.f32 -1.442695, %v1367_v26  ;;  %v2074_v48 = vpop.f32.mrb[43].mxu0 }
0x11e0   :  { %2231 = vpow2.f32 %v1820_v47 }
0x11e1   :  { %2233 = vtanh.f32 %v1301_v2 }
0x11e5   :  { %v2230_v49 = vpop.eup %2229 }
0x11e6   :  { %v1306_v50 = vadd.f32 1.0, %v2230_v49 }
0x11e8   :  { %2235 = vrcp.f32 %v1306_v50 }
0x11e9   :  { %2237 = vtanh.f32 %v1367_v26 }
0x11ea   :  { %v2232_v51 = vpop.eup %2231 }
0x11eb   :  { %v1372_v53 = vadd.f32 1.0, %v2232_v51  ;;  %v2234_v54 = vpop.eup %2233 }
0x11ed   :  { %2239 = vrcp.f32 %v1372_v53 }
0x11f2   :  { %v2236_v55 = vpop.eup %2235 }
0x11f3   :  { %v1309_v42 = vsel %vm2375_vm4, %v2234_v54, %v2236_v55  ;;  %v2238_v56 = vpop.eup %2237 }
0x11f4   :  { %1312 = vrot.lane.b32.xlu0 %v1309_v42, %s2280_s20  ;;  %v1310_v7 = vmul.f32 %v1309_v42, %v2647_v14 }
0x11f7   :  { %v2240_v57 = vpop.eup %2239 }
0x11f8   :  { %v1375_v58 = vsel %vm2375_vm4, %v2238_v56, %v2240_v57 }
0x11f9   :  { %1378 = vrot.lane.b32.xlu1 %v1375_v58, %s2280_s20  ;;  %v1376_v1 = vmul.f32 %v1375_v58, %v2649_v15 }
0x1266   :  { %v1313_v59 = vpop.permute.xlu0 %1312 }
0x1267   :  { %v1315_v60 = vmul.f32 %v1313_v59, %v1309_v42 }
0x1269   :  { %1317 = vrot.lane.b32.xlu0 %v1315_v60, %s2281_s21 }
0x126b   :  { %v1379_v61 = vpop.permute.xlu1 %1378 }
0x126c   :  { %v1381_v62 = vmul.f32 %v1379_v61, %v1375_v58 }
0x126e   :  { %1383 = vrot.lane.b32.xlu1 %v1381_v62, %s2281_s21 }
0x12db   :  { %v1318_v45 = vpop.permute.xlu0 %1317 }
0x12dc   :  { %v2700_v63 = vadd.f32 %v1318_v45, %v1310_v7 }
0x12de   :  { %2241 = vtanh.f32 %v2700_v63 }
0x12e0   :  { %v1384_v3 = vpop.permute.xlu1 %1383 }
0x12e1   :  { %v2704_v4 = vadd.f32 %v1384_v3, %v1376_v1 }
0x12e3   :  { %2243 = vtanh.f32 %v2704_v4 }
0x12e8   :  { %v2242_v6 = vpop.eup %2241 }
0x12e9   :  { %1323 = vrot.lane.b32.xlu0 %v2242_v6, %s2280_s20 }
0x12ed   :  { %v2244_v11 = vpop.eup %2243 }
0x12ee   :  { %1389 = vrot.lane.b32.xlu1 %v2244_v11, %s2280_s20 }
0x135b   :  { %v1324_v43 = vpop.permute.xlu0 %1323 }
0x135c   :  { %v1326_v9 = vmul.f32 %v1324_v43, %v1309_v42 }
0x135e   :  { %v1394_v10 = vpack.c.bf16 %v1326_v9, %v1326_v9 }
0x1360   :  { %1396 = vrot.lane.b32.xlu0 %v1394_v10, %s2281_s21  ;;  %v1390_v12 = vpop.permute.xlu1 %1389 }
0x1361   :  { %v1392_v13 = vmul.f32 %v1390_v12, %v1375_v58 }
0x1363   :  { %v1393_v8 = vpack.c.bf16 %v1392_v13, %v1392_v13 }
0x1365   :  { %1442 = vrot.lane.b32.xlu1 %v1393_v8, %s2281_s21 }
0x13d2   :  { %v1397_v14 = vpop.permute.xlu0 %1396 }
0x13d3   :  { %2080 = vmatmul.mubr.msk.bf16.vlgmr.msra.gmra.mrb[40].mxu1 %vm184_vm5, %v1397_v14 }
0x13d4   :  { %2092 = vmatpush3.bf16.msra.mxu1 %v2662_v33  ;;  %2095 = vmatprep.mubr.msk.bf16.mxu1 %vm2278_vm0, %v2277_v0 }
0x13d5   :  { %2093 = vmatprep.subr.bf16.mxu1 %v2277_v0 }
0x13d7   :  { %v1443_v15 = vpop.permute.xlu1 %1442 }
0x13d8   :  { %2094 = vmatpush3.bf16.msra.mxu1 %v2271_v16  ;;  %2088 = vmatmul.mubr.msk.bf16.vlgmr.msra.gmra.mrb[44].mxu0 %vm184_vm5, %v1443_v15 }
0x13d9   :  { %2107 = vmatprep.subr.bf16.mxu1 %v2277_v0  ;;  %2100 = vmatpush3.bf16.msra.mxu0 %v2272_v17 }
0x13da   :  { %2101 = vmatprep.subr.bf16.mxu0 %v2277_v0  ;;  %2103 = vmatprep.mubr.msk.bf16.mxu0 %vm2278_vm0, %v2277_v0 }
0x13db   :  { %2096 = vmatmul.mubr.msk.bf16.vlgmr.msra.gmra.mrb[44].mxu1 %vm184_vm5, %v1443_v15  ;;  %v2276_v15 = vld [vmem:[%s2791_s6] ss:$0 sm:$0xff] }
0x13dc   :  { %2108 = vmatpush3.bf16.msra.mxu1 %v2273_v19  ;;  %2111 = vmatprep.mubr.msk.bf16.mxu1 %vm2278_vm0, %v2277_v0 }
0x13dd   :  { %2109 = vmatprep.subr.bf16.mxu1 %v2277_v0  ;;  %2102 = vmatpush3.bf16.msra.mxu0 %v2274_v18 }
0x13de   :  { %2115 = vmatprep.subr.bf16.mxu0 %v2277_v0 }
0x13e0   :  { %2110 = vmatpush3.bf16.msra.mxu1 %v2275_v20 }
0x14a6   :  { %v1435_v21 = vpop.f32.mrb[40].mxu1 }
0x14a7   :  { %v2081_v22 = vpop.f32.mrb[41].mxu1 }
0x14a8   :  { %v1438_v30 = vpop.f32.mrb[42].mxu1 }
0x14a9   :  { %v2082_v32 = vpop.f32.mrb[43].mxu1 }
0x14ab   :  { %v1481_v25 = vpop.f32.mrb[44].mxu0 }
0x14ac   :  { %v1482_v33 = vadd.f32 %v1481_v25, %v1435_v21  ;;  %v2089_v5 = vpop.f32.mrb[45].mxu0 }
0x14ad   :  { %v1484_v24 = vpop.f32.mrb[46].mxu0 }
0x14ae   :  { %v1487_v28 = vadd.f32 %v2459_v52, %v1482_v33  ;;  %v1547_v36 = vpop.f32.mrb[44].mxu1  ;;  %v2090_v29 = vpop.f32.mrb[47].mxu0  ;;  %v2139_v24 = vld [vmem:[%s2792_s7] sm:$0xff]  }
0x14af   :  { %v1553_v27 = vadd.f32 %v1547_v36, %v164_v34  ;;  %v2097_v31 = vpop.f32.mrb[45].mxu1 }
0x14b0   :  { %v1823_v2 = vmul.f32 -1.442695, %v1487_v28  ;;  %v1550_v35 = vpop.f32.mrb[46].mxu1 }
0x14b1   :  { %v1825_v38 = vmul.f32 -1.442695, %v1553_v27  ;;  %v2098_v37 = vpop.f32.mrb[47].mxu1 }
0x14b2   :  { %2245 = vpow2.f32 %v1823_v2  ;;  %v1829_v2 = vld [vmem:[%s2793_s8] ss:$0 sm:$0xff] }
0x14b3   :  { %2247 = vpow2.f32 %v1825_v38 }
0x14b4   :  { %2249 = vtanh.f32 %v1487_v28 }
0x14b5   :  { %2251 = vtanh.f32 %v1553_v27 }
0x14bc   :  { %v2246_v40 = vpop.eup %2245 }
0x14bd   :  { %v2248_v26 = vpop.eup %2247  ;;  %v1492_v41 = vadd.f32 1.0, %v2246_v40 }
0x14be   :  { %v1558_v46 = vadd.f32 1.0, %v2248_v26  ;;  %v2250_v44 = vpop.eup %2249 }
0x14bf   :  { %2253 = vrcp.f32 %v1492_v41  ;;  %v2252_v52 = vpop.eup %2251 }
0x14c0   :  { %2255 = vrcp.f32 %v1558_v46 }
0x14c9   :  { %v2254_v39 = vpop.eup %2253 }
0x14ca   :  { %v2256_v47 = vpop.eup %2255  ;;  %v1495_v48 = vsel %vm2375_vm4, %v2250_v44, %v2254_v39 }
0x14cb   :  { %v1561_v49 = vsel %vm2375_vm4, %v2252_v52, %v2256_v47  ;;  %1498 = vrot.lane.b32.xlu0 %v1495_v48, %s2280_s20  ;;  %v1496_v55 = vmul.f32 %v1495_v48, %v2700_v63 }
0x14cc   :  { %1564 = vrot.lane.b32.xlu1 %v1561_v49, %s2280_s20  ;;  %v1562_v42 = vmul.f32 %v1561_v49, %v2704_v4 }
0x153d   :  { %v1499_v50 = vpop.permute.xlu0 %1498 }
0x153e   :  { %v1565_v51 = vpop.permute.xlu1 %1564  ;;  %v1501_v53 = vmul.f32 %v1499_v50, %v1495_v48 }
0x153f   :  { %v1567_v54 = vmul.f32 %v1565_v51, %v1561_v49 }
0x1540   :  { %1503 = vrot.lane.b32.xlu0 %v1501_v53, %s2281_s21 }
0x1541   :  { %1569 = vrot.lane.b32.xlu1 %v1567_v54, %s2281_s21 }
0x15b2   :  { %v1504_v56 = vpop.permute.xlu0 %1503 }
0x15b3   :  { %v1570_v57 = vpop.permute.xlu1 %1569  ;;  %v1506_v58 = vadd.f32 %v1504_v56, %v1496_v55 }
0x15b4   :  { %v1572_v59 = vadd.f32 %v1570_v57, %v1562_v42 }
0x15b5   :  { %2257 = vtanh.f32 %v1506_v58 }
0x15b6   :  { %2259 = vtanh.f32 %v1572_v59 }
0x15bf   :  { %v2258_v60 = vpop.eup %2257 }
0x15c0   :  { %v2260_v61 = vpop.eup %2259  ;;  %1509 = vrot.lane.b32.xlu0 %v2258_v60, %s2280_s20 }
0x15c1   :  { %1575 = vrot.lane.b32.xlu1 %v2260_v61, %s2280_s20 }
0x1632   :  { %v1510_v62 = vpop.permute.xlu0 %1509 }
0x1633   :  { %v1576_v7 = vpop.permute.xlu1 %1575  ;;  %v1512_v45 = vmul.f32 %v1510_v62, %v1495_v48 }
0x1634   :  { %v1578_v1 = vmul.f32 %v1576_v7, %v1561_v49 }
0x1635   :  { %v1580_v3 = vpack.c.bf16 %v1512_v45, %v1512_v45 }
0x1636   :  { %v1579_v63 = vpack.c.bf16 %v1578_v1, %v1578_v1 }
0x1637   :  { %1582 = vrot.lane.b32.xlu0 %v1580_v3, %s2281_s21 }
0x1638   :  { %1628 = vrot.lane.b32.xlu1 %v1579_v63, %s2281_s21 }
0x16a9   :  { %v1583_v4 = vpop.permute.xlu0 %1582 }
0x16aa   :  { %v1629_v6 = vpop.permute.xlu1 %1628  ;;  %2104 = vmatmul.mubr.msk.bf16.vlgmr.msra.gmra.mrb[48].mxu0 %vm184_vm5, %v1583_v4 }
0x16ab   :  { %2112 = vmatmul.mubr.msk.bf16.vlgmr.msra.gmra.mrb[48].mxu1 %vm184_vm5, %v1629_v6  ;;  %2119 = vmatprep.mubr.msk.bf16.mxu0 %vm2278_vm0, %v2277_v0 }
0x16ac   :  { %2116 = vmatpush3.bf16.msra.mxu0 %v2139_v24 }
0x16ad   :  { %2117 = vmatprep.subr.bf16.mxu0 %v2277_v0 }
0x16b0   :  { %2118 = vmatpush3.bf16.msra.mxu0 %v2140_v23 }
0x177d   :  { %v1621_v11 = vpop.f32.mrb[48].mxu0 }
0x177e   :  { %v1667_v43 = vpop.f32.mrb[48].mxu1  ;;  %v2105_v9 = vpop.f32.mrb[49].mxu0 }
0x177f   :  { %v1668_v10 = vadd.f32 %v1667_v43, %v1621_v11  ;;  %v2113_v12 = vpop.f32.mrb[49].mxu1  ;;  %v1624_v13 = vpop.f32.mrb[50].mxu0 }
0x1780   :  { %v1670_v8 = vpop.f32.mrb[50].mxu1  ;;  %v2106_v14 = vpop.f32.mrb[51].mxu0 }
0x1781   :  { %v1673_v16 = vadd.f32 %v2276_v15, %v1668_v10  ;;  %v2114_v17 = vpop.f32.mrb[51].mxu1 }
0x1783   :  { %v1828_v19 = vmul.f32 -1.442695, %v1673_v16 }
0x1785   :  { %2261 = vpow2.f32 %v1828_v19 }
0x1786   :  { %2263 = vtanh.f32 %v1673_v16 }
0x178f   :  { %v2262_v18 = vpop.eup %2261 }
0x1790   :  { %v1678_v20 = vadd.f32 1.0, %v2262_v18  ;;  %v2264_v21 = vpop.eup %2263 }
0x1792   :  { %2265 = vrcp.f32 %v1678_v20 }
0x179c   :  { %v2266_v22 = vpop.eup %2265 }
0x179d   :  { %v1681_v30 = vsel %vm2375_vm4, %v2264_v21, %v2266_v22 }
0x179e   :  { %1684 = vrot.lane.b32.xlu0 %v1681_v30, %s2280_s20  ;;  %v1682_v33 = vmul.f32 %v1681_v30, %v1506_v58 }
0x1810   :  { %v1685_v32 = vpop.permute.xlu0 %1684 }
0x1811   :  { %v1687_v25 = vmul.f32 %v1685_v32, %v1681_v30 }
0x1813   :  { %1689 = vrot.lane.b32.xlu1 %v1687_v25, %s2281_s21 }
0x1885   :  { %v1690_v5 = vpop.permute.xlu1 %1689 }
0x1886   :  { %v1692_v34 = vadd.f32 %v1690_v5, %v1682_v33 }
0x1888   :  { %2267 = vtanh.f32 %v1692_v34 }
0x1892   :  { %v2268_v28 = vpop.eup %2267 }
0x1893   :  { %1695 = vrot.lane.b32.xlu0 %v2268_v28, %s2280_s20 }
0x1905   :  { %v1696_v36 = vpop.permute.xlu0 %1695 }
0x1906   :  { %v1698_v29 = vmul.f32 %v1696_v36, %v1681_v30 }
0x1908   :  { %v1699_v27 = vpack.c.bf16 %v1698_v29, %v1698_v29 }
0x190a   :  { %1712 = vrot.lane.b32.xlu1 %v1699_v27, %s2281_s21 }
0x197c   :  { %v1713_v31 = vpop.permute.xlu1 %1712 }
0x197d   :  { %2120 = vmatmul.mubr.msk.bf16.vlgmr.msra.gmra.mrb[52].mxu0 %vm184_vm5, %v1713_v31 }
0x1a50   :  { %v1763_v35 = vpop.f32.mrb[52].mxu0 }
0x1a51   :  { %v1764_v38 = vadd.f32 %v1829_v2, %v1763_v35  ;;  %v2121_v37 = vpop.f32.mrb[53].mxu0 }
0x1a52   :  { %v1766_v0 = vpop.f32.mrb[54].mxu0 }
0x1a53   :  { %1769 = vst [vmem:[%s2794_s9] sm:$0xff] %v1764_v38  ;;  %v2122_v40 = vpop.f32.mrb[55].mxu0 }

</bundles_post_ra>
